<compile_context>
chip_gen: v7x
topology: tpu7x:2x2x1
jax: 0.10.0
libtpu: 0.0.40
codegen_flags: <defaults>
</compile_context>

<pallas_src>
import functools
import math

import numpy as np
import jax
import jax.numpy as jnp
from jax.experimental import pallas as pl
from jax.experimental.pallas import tpu as pltpu


def bilstm_layer_kernel(x_ref, w_ih_ref, w_hh_f_ref, w_hh_b_ref, b_ref,
                        y_ref, hlast_ref, gx_ref, *, seq_len, batch):
    """One bidirectional LSTM layer (PyTorch gate order i, f, g, o).

    x:      [L*B, Din]   time-major, row = t*B + b
    w_ih:   [Din, 8H]    fwd 4H | bwd 4H   (transposed, bias folded in b)
    w_hh_f: [H, 4H]      w_hh_b: [H, 4H]
    b:      [1, 8H]      (b_ih + b_hh, fwd | bwd)
    y:      [L*B, 2H]    per-step hidden (fwd | bwd)  -> next layer's input
    hlast:  [B, 2H]      final hidden of each direction (fwd | bwd)
    gx:     [L*B, 8H]    VMEM scratch, hoisted input projections
    """
    L, B = seq_len, batch
    H4 = w_hh_f_ref.shape[1]
    H = H4 // 4

    # ---- hoisted input projection: one batched MXU matmul for every time
    #      step of both directions (off the serial recurrence). ----
    gx_ref[...] = (jnp.dot(x_ref[...], w_ih_ref[...],
                           preferred_element_type=jnp.float32) + b_ref[...])

    w_hh_f = w_hh_f_ref[...]
    w_hh_b = w_hh_b_ref[...]

    def cell(g, c):
        i = jax.nn.sigmoid(g[:, 0 * H:1 * H])
        f = jax.nn.sigmoid(g[:, 1 * H:2 * H])
        gg = jnp.tanh(g[:, 2 * H:3 * H])
        o = jax.nn.sigmoid(g[:, 3 * H:4 * H])
        c_new = f * c + i * gg
        return o * jnp.tanh(c_new), c_new

    h_f = jnp.zeros((B, H), jnp.float32)
    c_f = jnp.zeros((B, H), jnp.float32)
    h_b = jnp.zeros((B, H), jnp.float32)
    c_b = jnp.zeros((B, H), jnp.float32)

    # L is small & static here -> fully unrolled recurrence (fwd and bwd
    # interleaved in one serial chain of length L).
    for t in range(L):
        tb = L - 1 - t
        g_f = gx_ref[t * B:(t + 1) * B, :H4] + jnp.dot(
            h_f, w_hh_f, preferred_element_type=jnp.float32)
        g_b = gx_ref[tb * B:(tb + 1) * B, H4:] + jnp.dot(
            h_b, w_hh_b, preferred_element_type=jnp.float32)
        h_f, c_f = cell(g_f, c_f)
        h_b, c_b = cell(g_b, c_b)
        y_ref[t * B:(t + 1) * B, :H] = h_f
        y_ref[tb * B:(tb + 1) * B, H:] = h_b

    hlast_ref[:, :H] = h_f
    hlast_ref[:, H:] = h_b


def head_kernel(h_ref, w1_ref, b1_ref, w2_ref, b2_ref, out_ref):
    """out = fc(relu(fc_1(relu(h))))."""
    h = jnp.maximum(h_ref[...], 0.0)
    z = jnp.dot(h, w1_ref[...], preferred_element_type=jnp.float32) + b1_ref[...]
    z = jnp.maximum(z, 0.0)
    out_ref[...] = (jnp.dot(z, w2_ref[...],
                            preferred_element_type=jnp.float32) + b2_ref[...])


def _bilstm_layer(x_flat, w_ih_cat, w_hh_f_t, w_hh_b_t, b_cat,
                  *, seq_len, batch, hidden):
    LB, din = x_flat.shape
    H = hidden
    kernel = functools.partial(bilstm_layer_kernel, seq_len=seq_len, batch=batch)
    grid_spec = pltpu.PrefetchScalarGridSpec(
        num_scalar_prefetch=0,
        grid=(1,),
        in_specs=[
            pl.BlockSpec((LB, din), lambda i: (0, 0)),
            pl.BlockSpec((din, 8 * H), lambda i: (0, 0)),
            pl.BlockSpec((H, 4 * H), lambda i: (0, 0)),
            pl.BlockSpec((H, 4 * H), lambda i: (0, 0)),
            pl.BlockSpec((1, 8 * H), lambda i: (0, 0)),
        ],
        out_specs=[
            pl.BlockSpec((LB, 2 * H), lambda i: (0, 0)),
            pl.BlockSpec((batch, 2 * H), lambda i: (0, 0)),
        ],
        scratch_shapes=[pltpu.VMEM((LB, 8 * H), jnp.float32)],
    )
    y, hlast = pl.pallas_call(
        kernel,
        out_shape=(jax.ShapeDtypeStruct((LB, 2 * H), jnp.float32),
                   jax.ShapeDtypeStruct((batch, 2 * H), jnp.float32)),
        grid_spec=grid_spec,
        compiler_params=pltpu.CompilerParams(dimension_semantics=("arbitrary",)),
    )(x_flat, w_ih_cat, w_hh_f_t, w_hh_b_t, b_cat)
    return y, hlast


def _head(h_top, w1_t, b1, w2_t, b2):
    B, H = h_top.shape
    F1 = w1_t.shape[1]
    C = w2_t.shape[1]
    grid_spec = pltpu.PrefetchScalarGridSpec(
        num_scalar_prefetch=0,
        grid=(1,),
        in_specs=[
            pl.BlockSpec((B, H), lambda i: (0, 0)),
            pl.BlockSpec((H, F1), lambda i: (0, 0)),
            pl.BlockSpec((1, F1), lambda i: (0, 0)),
            pl.BlockSpec((F1, C), lambda i: (0, 0)),
            pl.BlockSpec((1, C), lambda i: (0, 0)),
        ],
        out_specs=pl.BlockSpec((B, C), lambda i: (0, 0)),
    )
    return pl.pallas_call(
        head_kernel,
        out_shape=jax.ShapeDtypeStruct((B, C), jnp.float32),
        grid_spec=grid_spec,
        compiler_params=pltpu.CompilerParams(dimension_semantics=("arbitrary",)),
    )(h_top, w1_t, b1, w2_t, b2)


def lstm_forward(x, layer_params, fc1_w, fc1_b, fc_w, fc_b, hidden_size):
    """x: [B, L, input_size] (batch_first, as in the PyTorch module)."""
    B, L, din0 = x.shape
    H = hidden_size
    # Single boundary transpose to time-major, flattened to [L*B, D]; every
    # layer consumes/produces this flat layout, so no other transposes occur.
    inp = jnp.transpose(x, (1, 0, 2)).reshape(L * B, din0).astype(jnp.float32)
    hlast = None
    for p in layer_params:
        w_ih_cat = jnp.concatenate(
            [p["w_ih_f"].T, p["w_ih_b"].T], axis=1).astype(jnp.float32)
        b_cat = jnp.concatenate(
            [p["b_ih_f"] + p["b_hh_f"],
             p["b_ih_b"] + p["b_hh_b"]])[None, :].astype(jnp.float32)
        inp, hlast = _bilstm_layer(
            inp, w_ih_cat,
            p["w_hh_f"].T.astype(jnp.float32),
            p["w_hh_b"].T.astype(jnp.float32),
            b_cat, seq_len=L, batch=B, hidden=H)
    h_top = hlast[:, H:]  # hn[-1]: reverse direction of the top layer
    return _head(h_top,
                 fc1_w.T.astype(jnp.float32), fc1_b[None, :].astype(jnp.float32),
                 fc_w.T.astype(jnp.float32), fc_b[None, :].astype(jnp.float32))


# ----------------------------- numpy reference -----------------------------

def _sigmoid(v):
    return 1.0 / (1.0 + np.exp(-v))


def ref_forward(x, layer_params, fc1_w, fc1_b, fc_w, fc_b, H):
    x = np.asarray(x, np.float32)
    B, L, _ = x.shape

    def run_dir(inp, w_ih, w_hh, b_ih, b_hh, reverse):
        h = np.zeros((B, H), np.float32)
        c = np.zeros((B, H), np.float32)
        out = np.zeros((B, L, H), np.float32)
        order = range(L - 1, -1, -1) if reverse else range(L)
        for t in order:
            g = inp[:, t] @ w_ih.T + b_ih + h @ w_hh.T + b_hh
            i = _sigmoid(g[:, :H])
            f = _sigmoid(g[:, H:2 * H])
            gg = np.tanh(g[:, 2 * H:3 * H])
            o = _sigmoid(g[:, 3 * H:])
            c = f * c + i * gg
            h = o * np.tanh(c)
            out[:, t] = h
        return out, h

    inp = x
    h_b_last = None
    for p in layer_params:
        of, _ = run_dir(inp, np.asarray(p["w_ih_f"], np.float32),
                        np.asarray(p["w_hh_f"], np.float32),
                        np.asarray(p["b_ih_f"], np.float32),
                        np.asarray(p["b_hh_f"], np.float32), False)
        ob, h_b_last = run_dir(inp, np.asarray(p["w_ih_b"], np.float32),
                               np.asarray(p["w_hh_b"], np.float32),
                               np.asarray(p["b_ih_b"], np.float32),
                               np.asarray(p["b_hh_b"], np.float32), True)
        inp = np.concatenate([of, ob], axis=-1)

    h_top = np.maximum(h_b_last, 0.0)
    z = np.maximum(h_top @ np.asarray(fc1_w, np.float32).T
                   + np.asarray(fc1_b, np.float32), 0.0)
    return z @ np.asarray(fc_w, np.float32).T + np.asarray(fc_b, np.float32)


if __name__ == "__main__":
    B, L = 2, 8
    input_size, hidden_size, num_layers, num_classes = 32, 32, 2, 10
    H = hidden_size

    key = jax.random.PRNGKey(0)
    key, kx = jax.random.split(key)
    x = jax.random.normal(kx, (B, L, input_size), jnp.float32)

    s = 1.0 / math.sqrt(H)
    layer_params = []
    for layer in range(num_layers):
        din = input_size if layer == 0 else 2 * H
        p = {}
        for name, shape in [("w_ih_f", (4 * H, din)), ("w_hh_f", (4 * H, H)),
                            ("b_ih_f", (4 * H,)), ("b_hh_f", (4 * H,)),
                            ("w_ih_b", (4 * H, din)), ("w_hh_b", (4 * H, H)),
                            ("b_ih_b", (4 * H,)), ("b_hh_b", (4 * H,))]:
            key, k = jax.random.split(key)
            p[name] = jax.random.uniform(k, shape, jnp.float32, -s, s)
        layer_params.append(p)

    key, k1, k2, k3, k4 = jax.random.split(key, 5)
    fc1_w = jax.random.uniform(k1, (128, H), jnp.float32, -s, s)
    fc1_b = jax.random.uniform(k2, (128,), jnp.float32, -s, s)
    sc = 1.0 / math.sqrt(128)
    fc_w = jax.random.uniform(k3, (num_classes, 128), jnp.float32, -sc, sc)
    fc_b = jax.random.uniform(k4, (num_classes,), jnp.float32, -sc, sc)

    out = lstm_forward(x, layer_params, fc1_w, fc1_b, fc_w, fc_b, H)
    out = jax.block_until_ready(out)

    ref = ref_forward(x, layer_params, fc1_w, fc1_b, fc_w, fc_b, H)
    assert np.allclose(np.asarray(out), ref, atol=1e-3, rtol=1e-3), (
        np.asarray(out), ref)

    print("KERNEL_OK")
</pallas_src>

<mosaic_0001>
module attributes {stable_mosaic.version = 11 : i64} {
  func.func @bilstm_layer_kernel(%arg0: i32, %arg1: memref<16x32xf32, #tpu.memory_space<vmem>>, %arg2: memref<32x256xf32, #tpu.memory_space<vmem>>, %arg3: memref<32x128xf32, #tpu.memory_space<vmem>>, %arg4: memref<32x128xf32, #tpu.memory_space<vmem>>, %arg5: memref<1x256xf32, #tpu.memory_space<vmem>>, %arg6: memref<16x64xf32, #tpu.memory_space<vmem>>, %arg7: memref<2x64xf32, #tpu.memory_space<vmem>>, %arg8: memref<16x256xf32, #tpu.memory_space<vmem>>) attributes {dimension_semantics = [#tpu.dimension_semantics<arbitrary>], iteration_bounds = array<i64: 1>, scalar_prefetch = 0 : i64, scratch_operands = 1 : i64, tpu.core_type = #tpu.core_type<tc>, window_params = [{pipeline_mode = #tpu.pipeline_mode<synchronous>, transform_indices = @transform_0, window_bounds = array<i64: 16, 32>}, {pipeline_mode = #tpu.pipeline_mode<synchronous>, transform_indices = @transform_1, window_bounds = array<i64: 32, 256>}, {pipeline_mode = #tpu.pipeline_mode<synchronous>, transform_indices = @transform_2, window_bounds = array<i64: 32, 128>}, {pipeline_mode = #tpu.pipeline_mode<synchronous>, transform_indices = @transform_3, window_bounds = array<i64: 32, 128>}, {pipeline_mode = #tpu.pipeline_mode<synchronous>, transform_indices = @transform_4, window_bounds = array<i64: 1, 256>}, {pipeline_mode = #tpu.pipeline_mode<synchronous>, transform_indices = @transform_5, window_bounds = array<i64: 16, 64>}, {pipeline_mode = #tpu.pipeline_mode<synchronous>, transform_indices = @transform_6, window_bounds = array<i64: 2, 64>}]} {
    %c0 = arith.constant 0 : index
    %c0_0 = arith.constant 0 : index
    %0 = vector.load %arg1[%c0, %c0_0] : memref<16x32xf32, #tpu.memory_space<vmem>>, vector<16x32xf32>
    %c0_1 = arith.constant 0 : index
    %c0_2 = arith.constant 0 : index
    %1 = vector.load %arg2[%c0_1, %c0_2] : memref<32x256xf32, #tpu.memory_space<vmem>>, vector<32x256xf32>
    %cst = arith.constant dense<0.000000e+00> : vector<16x256xf32>
    %2 = tpu.matmul %0, %1, %cst {dimension_numbers = #tpu.dot_dimension_numbers<[1], [0], [0], [1], [0, 0, 1, 1], [], []>} : vector<16x32xf32>, vector<32x256xf32>, vector<16x256xf32> -> vector<16x256xf32>
    %c0_3 = arith.constant 0 : index
    %c0_4 = arith.constant 0 : index
    %3 = vector.load %arg5[%c0_3, %c0_4] : memref<1x256xf32, #tpu.memory_space<vmem>>, vector<1x256xf32>
    %4 = vector.broadcast %3 : vector<1x256xf32> to vector<16x256xf32>
    %5 = arith.addf %2, %4 : vector<16x256xf32>
    %c0_5 = arith.constant 0 : index
    %c0_6 = arith.constant 0 : index
    %6 = vector.load %arg8[%c0_5, %c0_6] : memref<16x256xf32, #tpu.memory_space<vmem>>, vector<16x256xf32>
    tpu.vector_store %arg8[%c0_5, %c0_6], %5 {strides = array<i32>} : memref<16x256xf32, #tpu.memory_space<vmem>>, vector<16x256xf32>,
    %c0_7 = arith.constant 0 : index
    %c0_8 = arith.constant 0 : index
    %7 = vector.load %arg3[%c0_7, %c0_8] : memref<32x128xf32, #tpu.memory_space<vmem>>, vector<32x128xf32>
    %c0_9 = arith.constant 0 : index
    %c0_10 = arith.constant 0 : index
    %8 = vector.load %arg4[%c0_9, %c0_10] : memref<32x128xf32, #tpu.memory_space<vmem>>, vector<32x128xf32>
    %cst_11 = arith.constant 0.000000e+00 : f32
    %9 = vector.broadcast %cst_11 : f32 to vector<2x32xf32>
    %cst_12 = arith.constant 0.000000e+00 : f32
    %10 = vector.broadcast %cst_12 : f32 to vector<2x32xf32>
    %cst_13 = arith.constant 0.000000e+00 : f32
    %11 = vector.broadcast %cst_13 : f32 to vector<2x32xf32>
    %cst_14 = arith.constant 0.000000e+00 : f32
    %12 = vector.broadcast %cst_14 : f32 to vector<2x32xf32>
    %c0_15 = arith.constant 0 : index
    %c0_16 = arith.constant 0 : index
    %13 = vector.load %arg8[%c0_15, %c0_16] : memref<16x256xf32, #tpu.memory_space<vmem>>, vector<2x128xf32>
    %cst_17 = arith.constant dense<0.000000e+00> : vector<2x128xf32>
    %14 = tpu.matmul %9, %7, %cst_17 {dimension_numbers = #tpu.dot_dimension_numbers<[1], [0], [0], [1], [0, 0, 1, 1], [], []>} : vector<2x32xf32>, vector<32x128xf32>, vector<2x128xf32> -> vector<2x128xf32>
    %15 = arith.addf %13, %14 : vector<2x128xf32>
    %c14 = arith.constant 14 : index
    %c128 = arith.constant 128 : index
    %16 = vector.load %arg8[%c14, %c128] : memref<16x256xf32, #tpu.memory_space<vmem>>, vector<2x128xf32>
    %cst_18 = arith.constant dense<0.000000e+00> : vector<2x128xf32>
    %17 = tpu.matmul %11, %8, %cst_18 {dimension_numbers = #tpu.dot_dimension_numbers<[1], [0], [0], [1], [0, 0, 1, 1], [], []>} : vector<2x32xf32>, vector<32x128xf32>, vector<2x128xf32> -> vector<2x128xf32>
    %18 = arith.addf %16, %17 : vector<2x128xf32>
    %19 = vector.extract_strided_slice %15 {offsets = [0, 0], sizes = [2, 32], strides = [1, 1]} : vector<2x128xf32> to vector<2x32xf32>
    %20 = arith.negf %19 : vector<2x32xf32>
    %21 = math.exp %20 : vector<2x32xf32>
    %cst_19 = arith.constant 1.000000e+00 : f32
    %22 = vector.broadcast %cst_19 : f32 to vector<2x32xf32>
    %23 = arith.addf %22, %21 : vector<2x32xf32>
    %24 = arith.divf %22, %23 : vector<2x32xf32>
    %25 = vector.extract_strided_slice %15 {offsets = [0, 32], sizes = [2, 32], strides = [1, 1]} : vector<2x128xf32> to vector<2x32xf32>
    %26 = arith.negf %25 : vector<2x32xf32>
    %27 = math.exp %26 : vector<2x32xf32>
    %cst_20 = arith.constant 1.000000e+00 : f32
    %28 = vector.broadcast %cst_20 : f32 to vector<2x32xf32>
    %29 = arith.addf %28, %27 : vector<2x32xf32>
    %30 = arith.divf %28, %29 : vector<2x32xf32>
    %31 = vector.extract_strided_slice %15 {offsets = [0, 64], sizes = [2, 32], strides = [1, 1]} : vector<2x128xf32> to vector<2x32xf32>
    %32 = math.tanh %31 : vector<2x32xf32>
    %33 = vector.extract_strided_slice %15 {offsets = [0, 96], sizes = [2, 32], strides = [1, 1]} : vector<2x128xf32> to vector<2x32xf32>
    %34 = arith.negf %33 : vector<2x32xf32>
    %35 = math.exp %34 : vector<2x32xf32>
    %cst_21 = arith.constant 1.000000e+00 : f32
    %36 = vector.broadcast %cst_21 : f32 to vector<2x32xf32>
    %37 = arith.addf %36, %35 : vector<2x32xf32>
    %38 = arith.divf %36, %37 : vector<2x32xf32>
    %39 = arith.mulf %30, %10 : vector<2x32xf32>
    %40 = arith.mulf %24, %32 : vector<2x32xf32>
    %41 = arith.addf %39, %40 : vector<2x32xf32>
    %42 = math.tanh %41 : vector<2x32xf32>
    %43 = arith.mulf %38, %42 : vector<2x32xf32>
    %44 = vector.extract_strided_slice %18 {offsets = [0, 0], sizes = [2, 32], strides = [1, 1]} : vector<2x128xf32> to vector<2x32xf32>
    %45 = arith.negf %44 : vector<2x32xf32>
    %46 = math.exp %45 : vector<2x32xf32>
    %cst_22 = arith.constant 1.000000e+00 : f32
    %47 = vector.broadcast %cst_22 : f32 to vector<2x32xf32>
    %48 = arith.addf %47, %46 : vector<2x32xf32>
    %49 = arith.divf %47, %48 : vector<2x32xf32>
    %50 = vector.extract_strided_slice %18 {offsets = [0, 32], sizes = [2, 32], strides = [1, 1]} : vector<2x128xf32> to vector<2x32xf32>
    %51 = arith.negf %50 : vector<2x32xf32>
    %52 = math.exp %51 : vector<2x32xf32>
    %cst_23 = arith.constant 1.000000e+00 : f32
    %53 = vector.broadcast %cst_23 : f32 to vector<2x32xf32>
    %54 = arith.addf %53, %52 : vector<2x32xf32>
    %55 = arith.divf %53, %54 : vector<2x32xf32>
    %56 = vector.extract_strided_slice %18 {offsets = [0, 64], sizes = [2, 32], strides = [1, 1]} : vector<2x128xf32> to vector<2x32xf32>
    %57 = math.tanh %56 : vector<2x32xf32>
    %58 = vector.extract_strided_slice %18 {offsets = [0, 96], sizes = [2, 32], strides = [1, 1]} : vector<2x128xf32> to vector<2x32xf32>
    %59 = arith.negf %58 : vector<2x32xf32>
    %60 = math.exp %59 : vector<2x32xf32>
    %cst_24 = arith.constant 1.000000e+00 : f32
    %61 = vector.broadcast %cst_24 : f32 to vector<2x32xf32>
    %62 = arith.addf %61, %60 : vector<2x32xf32>
    %63 = arith.divf %61, %62 : vector<2x32xf32>
    %64 = arith.mulf %55, %12 : vector<2x32xf32>
    %65 = arith.mulf %49, %57 : vector<2x32xf32>
    %66 = arith.addf %64, %65 : vector<2x32xf32>
    %67 = math.tanh %66 : vector<2x32xf32>
    %68 = arith.mulf %63, %67 : vector<2x32xf32>
    %c0_25 = arith.constant 0 : index
    %c0_26 = arith.constant 0 : index
    %69 = vector.load %arg6[%c0_25, %c0_26] : memref<16x64xf32, #tpu.memory_space<vmem>>, vector<2x32xf32>
    tpu.vector_store %arg6[%c0_25, %c0_26], %43 {strides = array<i32>} : memref<16x64xf32, #tpu.memory_space<vmem>>, vector<2x32xf32>,
    %c14_27 = arith.constant 14 : index
    %c32 = arith.constant 32 : index
    %70 = vector.load %arg6[%c14_27, %c32] : memref<16x64xf32, #tpu.memory_space<vmem>>, vector<2x32xf32>
    tpu.vector_store %arg6[%c14_27, %c32], %68 {strides = array<i32>} : memref<16x64xf32, #tpu.memory_space<vmem>>, vector<2x32xf32>,
    %c2 = arith.constant 2 : index
    %c0_28 = arith.constant 0 : index
    %71 = vector.load %arg8[%c2, %c0_28] : memref<16x256xf32, #tpu.memory_space<vmem>>, vector<2x128xf32>
    %cst_29 = arith.constant dense<0.000000e+00> : vector<2x128xf32>
    %72 = tpu.matmul %43, %7, %cst_29 {dimension_numbers = #tpu.dot_dimension_numbers<[1], [0], [0], [1], [0, 0, 1, 1], [], []>} : vector<2x32xf32>, vector<32x128xf32>, vector<2x128xf32> -> vector<2x128xf32>
    %73 = arith.addf %71, %72 : vector<2x128xf32>
    %c12 = arith.constant 12 : index
    %c128_30 = arith.constant 128 : index
    %74 = vector.load %arg8[%c12, %c128_30] : memref<16x256xf32, #tpu.memory_space<vmem>>, vector<2x128xf32>
    %cst_31 = arith.constant dense<0.000000e+00> : vector<2x128xf32>
    %75 = tpu.matmul %68, %8, %cst_31 {dimension_numbers = #tpu.dot_dimension_numbers<[1], [0], [0], [1], [0, 0, 1, 1], [], []>} : vector<2x32xf32>, vector<32x128xf32>, vector<2x128xf32> -> vector<2x128xf32>
    %76 = arith.addf %74, %75 : vector<2x128xf32>
    %77 = vector.extract_strided_slice %73 {offsets = [0, 0], sizes = [2, 32], strides = [1, 1]} : vector<2x128xf32> to vector<2x32xf32>
    %78 = arith.negf %77 : vector<2x32xf32>
    %79 = math.exp %78 : vector<2x32xf32>
    %cst_32 = arith.constant 1.000000e+00 : f32
    %80 = vector.broadcast %cst_32 : f32 to vector<2x32xf32>
    %81 = arith.addf %80, %79 : vector<2x32xf32>
    %82 = arith.divf %80, %81 : vector<2x32xf32>
    %83 = vector.extract_strided_slice %73 {offsets = [0, 32], sizes = [2, 32], strides = [1, 1]} : vector<2x128xf32> to vector<2x32xf32>
    %84 = arith.negf %83 : vector<2x32xf32>
    %85 = math.exp %84 : vector<2x32xf32>
    %cst_33 = arith.constant 1.000000e+00 : f32
    %86 = vector.broadcast %cst_33 : f32 to vector<2x32xf32>
    %87 = arith.addf %86, %85 : vector<2x32xf32>
    %88 = arith.divf %86, %87 : vector<2x32xf32>
    %89 = vector.extract_strided_slice %73 {offsets = [0, 64], sizes = [2, 32], strides = [1, 1]} : vector<2x128xf32> to vector<2x32xf32>
    %90 = math.tanh %89 : vector<2x32xf32>
    %91 = vector.extract_strided_slice %73 {offsets = [0, 96], sizes = [2, 32], strides = [1, 1]} : vector<2x128xf32> to vector<2x32xf32>
    %92 = arith.negf %91 : vector<2x32xf32>
    %93 = math.exp %92 : vector<2x32xf32>
    %cst_34 = arith.constant 1.000000e+00 : f32
    %94 = vector.broadcast %cst_34 : f32 to vector<2x32xf32>
    %95 = arith.addf %94, %93 : vector<2x32xf32>
    %96 = arith.divf %94, %95 : vector<2x32xf32>
    %97 = arith.mulf %88, %41 : vector<2x32xf32>
    %98 = arith.mulf %82, %90 : vector<2x32xf32>
    %99 = arith.addf %97, %98 : vector<2x32xf32>
    %100 = math.tanh %99 : vector<2x32xf32>
    %101 = arith.mulf %96, %100 : vector<2x32xf32>
    %102 = vector.extract_strided_slice %76 {offsets = [0, 0], sizes = [2, 32], strides = [1, 1]} : vector<2x128xf32> to vector<2x32xf32>
    %103 = arith.negf %102 : vector<2x32xf32>
    %104 = math.exp %103 : vector<2x32xf32>
    %cst_35 = arith.constant 1.000000e+00 : f32
    %105 = vector.broadcast %cst_35 : f32 to vector<2x32xf32>
    %106 = arith.addf %105, %104 : vector<2x32xf32>
    %107 = arith.divf %105, %106 : vector<2x32xf32>
    %108 = vector.extract_strided_slice %76 {offsets = [0, 32], sizes = [2, 32], strides = [1, 1]} : vector<2x128xf32> to vector<2x32xf32>
    %109 = arith.negf %108 : vector<2x32xf32>
    %110 = math.exp %109 : vector<2x32xf32>
    %cst_36 = arith.constant 1.000000e+00 : f32
    %111 = vector.broadcast %cst_36 : f32 to vector<2x32xf32>
    %112 = arith.addf %111, %110 : vector<2x32xf32>
    %113 = arith.divf %111, %112 : vector<2x32xf32>
    %114 = vector.extract_strided_slice %76 {offsets = [0, 64], sizes = [2, 32], strides = [1, 1]} : vector<2x128xf32> to vector<2x32xf32>
    %115 = math.tanh %114 : vector<2x32xf32>
    %116 = vector.extract_strided_slice %76 {offsets = [0, 96], sizes = [2, 32], strides = [1, 1]} : vector<2x128xf32> to vector<2x32xf32>
    %117 = arith.negf %116 : vector<2x32xf32>
    %118 = math.exp %117 : vector<2x32xf32>
    %cst_37 = arith.constant 1.000000e+00 : f32
    %119 = vector.broadcast %cst_37 : f32 to vector<2x32xf32>
    %120 = arith.addf %119, %118 : vector<2x32xf32>
    %121 = arith.divf %119, %120 : vector<2x32xf32>
    %122 = arith.mulf %113, %66 : vector<2x32xf32>
    %123 = arith.mulf %107, %115 : vector<2x32xf32>
    %124 = arith.addf %122, %123 : vector<2x32xf32>
    %125 = math.tanh %124 : vector<2x32xf32>
    %126 = arith.mulf %121, %125 : vector<2x32xf32>
    %c2_38 = arith.constant 2 : index
    %c0_39 = arith.constant 0 : index
    %127 = vector.load %arg6[%c2_38, %c0_39] : memref<16x64xf32, #tpu.memory_space<vmem>>, vector<2x32xf32>
    tpu.vector_store %arg6[%c2_38, %c0_39], %101 {strides = array<i32>} : memref<16x64xf32, #tpu.memory_space<vmem>>, vector<2x32xf32>,
    %c12_40 = arith.constant 12 : index
    %c32_41 = arith.constant 32 : index
    %128 = vector.load %arg6[%c12_40, %c32_41] : memref<16x64xf32, #tpu.memory_space<vmem>>, vector<2x32xf32>
    tpu.vector_store %arg6[%c12_40, %c32_41], %126 {strides = array<i32>} : memref<16x64xf32, #tpu.memory_space<vmem>>, vector<2x32xf32>,
    %c4 = arith.constant 4 : index
    %c0_42 = arith.constant 0 : index
    %129 = vector.load %arg8[%c4, %c0_42] : memref<16x256xf32, #tpu.memory_space<vmem>>, vector<2x128xf32>
    %cst_43 = arith.constant dense<0.000000e+00> : vector<2x128xf32>
    %130 = tpu.matmul %101, %7, %cst_43 {dimension_numbers = #tpu.dot_dimension_numbers<[1], [0], [0], [1], [0, 0, 1, 1], [], []>} : vector<2x32xf32>, vector<32x128xf32>, vector<2x128xf32> -> vector<2x128xf32>
    %131 = arith.addf %129, %130 : vector<2x128xf32>
    %c10 = arith.constant 10 : index
    %c128_44 = arith.constant 128 : index
    %132 = vector.load %arg8[%c10, %c128_44] : memref<16x256xf32, #tpu.memory_space<vmem>>, vector<2x128xf32>
    %cst_45 = arith.constant dense<0.000000e+00> : vector<2x128xf32>
    %133 = tpu.matmul %126, %8, %cst_45 {dimension_numbers = #tpu.dot_dimension_numbers<[1], [0], [0], [1], [0, 0, 1, 1], [], []>} : vector<2x32xf32>, vector<32x128xf32>, vector<2x128xf32> -> vector<2x128xf32>
    %134 = arith.addf %132, %133 : vector<2x128xf32>
    %135 = vector.extract_strided_slice %131 {offsets = [0, 0], sizes = [2, 32], strides = [1, 1]} : vector<2x128xf32> to vector<2x32xf32>
    %136 = arith.negf %135 : vector<2x32xf32>
    %137 = math.exp %136 : vector<2x32xf32>
    %cst_46 = arith.constant 1.000000e+00 : f32
    %138 = vector.broadcast %cst_46 : f32 to vector<2x32xf32>
    %139 = arith.addf %138, %137 : vector<2x32xf32>
    %140 = arith.divf %138, %139 : vector<2x32xf32>
    %141 = vector.extract_strided_slice %131 {offsets = [0, 32], sizes = [2, 32], strides = [1, 1]} : vector<2x128xf32> to vector<2x32xf32>
    %142 = arith.negf %141 : vector<2x32xf32>
    %143 = math.exp %142 : vector<2x32xf32>
    %cst_47 = arith.constant 1.000000e+00 : f32
    %144 = vector.broadcast %cst_47 : f32 to vector<2x32xf32>
    %145 = arith.addf %144, %143 : vector<2x32xf32>
    %146 = arith.divf %144, %145 : vector<2x32xf32>
    %147 = vector.extract_strided_slice %131 {offsets = [0, 64], sizes = [2, 32], strides = [1, 1]} : vector<2x128xf32> to vector<2x32xf32>
    %148 = math.tanh %147 : vector<2x32xf32>
    %149 = vector.extract_strided_slice %131 {offsets = [0, 96], sizes = [2, 32], strides = [1, 1]} : vector<2x128xf32> to vector<2x32xf32>
    %150 = arith.negf %149 : vector<2x32xf32>
    %151 = math.exp %150 : vector<2x32xf32>
    %cst_48 = arith.constant 1.000000e+00 : f32
    %152 = vector.broadcast %cst_48 : f32 to vector<2x32xf32>
    %153 = arith.addf %152, %151 : vector<2x32xf32>
    %154 = arith.divf %152, %153 : vector<2x32xf32>
    %155 = arith.mulf %146, %99 : vector<2x32xf32>
    %156 = arith.mulf %140, %148 : vector<2x32xf32>
    %157 = arith.addf %155, %156 : vector<2x32xf32>
    %158 = math.tanh %157 : vector<2x32xf32>
    %159 = arith.mulf %154, %158 : vector<2x32xf32>
    %160 = vector.extract_strided_slice %134 {offsets = [0, 0], sizes = [2, 32], strides = [1, 1]} : vector<2x128xf32> to vector<2x32xf32>
    %161 = arith.negf %160 : vector<2x32xf32>
    %162 = math.exp %161 : vector<2x32xf32>
    %cst_49 = arith.constant 1.000000e+00 : f32
    %163 = vector.broadcast %cst_49 : f32 to vector<2x32xf32>
    %164 = arith.addf %163, %162 : vector<2x32xf32>
    %165 = arith.divf %163, %164 : vector<2x32xf32>
    %166 = vector.extract_strided_slice %134 {offsets = [0, 32], sizes = [2, 32], strides = [1, 1]} : vector<2x128xf32> to vector<2x32xf32>
    %167 = arith.negf %166 : vector<2x32xf32>
    %168 = math.exp %167 : vector<2x32xf32>
    %cst_50 = arith.constant 1.000000e+00 : f32
    %169 = vector.broadcast %cst_50 : f32 to vector<2x32xf32>
    %170 = arith.addf %169, %168 : vector<2x32xf32>
    %171 = arith.divf %169, %170 : vector<2x32xf32>
    %172 = vector.extract_strided_slice %134 {offsets = [0, 64], sizes = [2, 32], strides = [1, 1]} : vector<2x128xf32> to vector<2x32xf32>
    %173 = math.tanh %172 : vector<2x32xf32>
    %174 = vector.extract_strided_slice %134 {offsets = [0, 96], sizes = [2, 32], strides = [1, 1]} : vector<2x128xf32> to vector<2x32xf32>
    %175 = arith.negf %174 : vector<2x32xf32>
    %176 = math.exp %175 : vector<2x32xf32>
    %cst_51 = arith.constant 1.000000e+00 : f32
    %177 = vector.broadcast %cst_51 : f32 to vector<2x32xf32>
    %178 = arith.addf %177, %176 : vector<2x32xf32>
    %179 = arith.divf %177, %178 : vector<2x32xf32>
    %180 = arith.mulf %171, %124 : vector<2x32xf32>
    %181 = arith.mulf %165, %173 : vector<2x32xf32>
    %182 = arith.addf %180, %181 : vector<2x32xf32>
    %183 = math.tanh %182 : vector<2x32xf32>
    %184 = arith.mulf %179, %183 : vector<2x32xf32>
    %c4_52 = arith.constant 4 : index
    %c0_53 = arith.constant 0 : index
    %185 = vector.load %arg6[%c4_52, %c0_53] : memref<16x64xf32, #tpu.memory_space<vmem>>, vector<2x32xf32>
    tpu.vector_store %arg6[%c4_52, %c0_53], %159 {strides = array<i32>} : memref<16x64xf32, #tpu.memory_space<vmem>>, vector<2x32xf32>,
    %c10_54 = arith.constant 10 : index
    %c32_55 = arith.constant 32 : index
    %186 = vector.load %arg6[%c10_54, %c32_55] : memref<16x64xf32, #tpu.memory_space<vmem>>, vector<2x32xf32>
    tpu.vector_store %arg6[%c10_54, %c32_55], %184 {strides = array<i32>} : memref<16x64xf32, #tpu.memory_space<vmem>>, vector<2x32xf32>,
    %c6 = arith.constant 6 : index
    %c0_56 = arith.constant 0 : index
    %187 = vector.load %arg8[%c6, %c0_56] : memref<16x256xf32, #tpu.memory_space<vmem>>, vector<2x128xf32>
    %cst_57 = arith.constant dense<0.000000e+00> : vector<2x128xf32>
    %188 = tpu.matmul %159, %7, %cst_57 {dimension_numbers = #tpu.dot_dimension_numbers<[1], [0], [0], [1], [0, 0, 1, 1], [], []>} : vector<2x32xf32>, vector<32x128xf32>, vector<2x128xf32> -> vector<2x128xf32>
    %189 = arith.addf %187, %188 : vector<2x128xf32>
    %c8 = arith.constant 8 : index
    %c128_58 = arith.constant 128 : index
    %190 = vector.load %arg8[%c8, %c128_58] : memref<16x256xf32, #tpu.memory_space<vmem>>, vector<2x128xf32>
    %cst_59 = arith.constant dense<0.000000e+00> : vector<2x128xf32>
    %191 = tpu.matmul %184, %8, %cst_59 {dimension_numbers = #tpu.dot_dimension_numbers<[1], [0], [0], [1], [0, 0, 1, 1], [], []>} : vector<2x32xf32>, vector<32x128xf32>, vector<2x128xf32> -> vector<2x128xf32>
    %192 = arith.addf %190, %191 : vector<2x128xf32>
    %193 = vector.extract_strided_slice %189 {offsets = [0, 0], sizes = [2, 32], strides = [1, 1]} : vector<2x128xf32> to vector<2x32xf32>
    %194 = arith.negf %193 : vector<2x32xf32>
    %195 = math.exp %194 : vector<2x32xf32>
    %cst_60 = arith.constant 1.000000e+00 : f32
    %196 = vector.broadcast %cst_60 : f32 to vector<2x32xf32>
    %197 = arith.addf %196, %195 : vector<2x32xf32>
    %198 = arith.divf %196, %197 : vector<2x32xf32>
    %199 = vector.extract_strided_slice %189 {offsets = [0, 32], sizes = [2, 32], strides = [1, 1]} : vector<2x128xf32> to vector<2x32xf32>
    %200 = arith.negf %199 : vector<2x32xf32>
    %201 = math.exp %200 : vector<2x32xf32>
    %cst_61 = arith.constant 1.000000e+00 : f32
    %202 = vector.broadcast %cst_61 : f32 to vector<2x32xf32>
    %203 = arith.addf %202, %201 : vector<2x32xf32>
    %204 = arith.divf %202, %203 : vector<2x32xf32>
    %205 = vector.extract_strided_slice %189 {offsets = [0, 64], sizes = [2, 32], strides = [1, 1]} : vector<2x128xf32> to vector<2x32xf32>
    %206 = math.tanh %205 : vector<2x32xf32>
    %207 = vector.extract_strided_slice %189 {offsets = [0, 96], sizes = [2, 32], strides = [1, 1]} : vector<2x128xf32> to vector<2x32xf32>
    %208 = arith.negf %207 : vector<2x32xf32>
    %209 = math.exp %208 : vector<2x32xf32>
    %cst_62 = arith.constant 1.000000e+00 : f32
    %210 = vector.broadcast %cst_62 : f32 to vector<2x32xf32>
    %211 = arith.addf %210, %209 : vector<2x32xf32>
    %212 = arith.divf %210, %211 : vector<2x32xf32>
    %213 = arith.mulf %204, %157 : vector<2x32xf32>
    %214 = arith.mulf %198, %206 : vector<2x32xf32>
    %215 = arith.addf %213, %214 : vector<2x32xf32>
    %216 = math.tanh %215 : vector<2x32xf32>
    %217 = arith.mulf %212, %216 : vector<2x32xf32>
    %218 = vector.extract_strided_slice %192 {offsets = [0, 0], sizes = [2, 32], strides = [1, 1]} : vector<2x128xf32> to vector<2x32xf32>
    %219 = arith.negf %218 : vector<2x32xf32>
    %220 = math.exp %219 : vector<2x32xf32>
    %cst_63 = arith.constant 1.000000e+00 : f32
    %221 = vector.broadcast %cst_63 : f32 to vector<2x32xf32>
    %222 = arith.addf %221, %220 : vector<2x32xf32>
    %223 = arith.divf %221, %222 : vector<2x32xf32>
    %224 = vector.extract_strided_slice %192 {offsets = [0, 32], sizes = [2, 32], strides = [1, 1]} : vector<2x128xf32> to vector<2x32xf32>
    %225 = arith.negf %224 : vector<2x32xf32>
    %226 = math.exp %225 : vector<2x32xf32>
    %cst_64 = arith.constant 1.000000e+00 : f32
    %227 = vector.broadcast %cst_64 : f32 to vector<2x32xf32>
    %228 = arith.addf %227, %226 : vector<2x32xf32>
    %229 = arith.divf %227, %228 : vector<2x32xf32>
    %230 = vector.extract_strided_slice %192 {offsets = [0, 64], sizes = [2, 32], strides = [1, 1]} : vector<2x128xf32> to vector<2x32xf32>
    %231 = math.tanh %230 : vector<2x32xf32>
    %232 = vector.extract_strided_slice %192 {offsets = [0, 96], sizes = [2, 32], strides = [1, 1]} : vector<2x128xf32> to vector<2x32xf32>
    %233 = arith.negf %232 : vector<2x32xf32>
    %234 = math.exp %233 : vector<2x32xf32>
    %cst_65 = arith.constant 1.000000e+00 : f32
    %235 = vector.broadcast %cst_65 : f32 to vector<2x32xf32>
    %236 = arith.addf %235, %234 : vector<2x32xf32>
    %237 = arith.divf %235, %236 : vector<2x32xf32>
    %238 = arith.mulf %229, %182 : vector<2x32xf32>
    %239 = arith.mulf %223, %231 : vector<2x32xf32>
    %240 = arith.addf %238, %239 : vector<2x32xf32>
    %241 = math.tanh %240 : vector<2x32xf32>
    %242 = arith.mulf %237, %241 : vector<2x32xf32>
    %c6_66 = arith.constant 6 : index
    %c0_67 = arith.constant 0 : index
    %243 = vector.load %arg6[%c6_66, %c0_67] : memref<16x64xf32, #tpu.memory_space<vmem>>, vector<2x32xf32>
    tpu.vector_store %arg6[%c6_66, %c0_67], %217 {strides = array<i32>} : memref<16x64xf32, #tpu.memory_space<vmem>>, vector<2x32xf32>,
    %c8_68 = arith.constant 8 : index
    %c32_69 = arith.constant 32 : index
    %244 = vector.load %arg6[%c8_68, %c32_69] : memref<16x64xf32, #tpu.memory_space<vmem>>, vector<2x32xf32>
    tpu.vector_store %arg6[%c8_68, %c32_69], %242 {strides = array<i32>} : memref<16x64xf32, #tpu.memory_space<vmem>>, vector<2x32xf32>,
    %c8_70 = arith.constant 8 : index
    %c0_71 = arith.constant 0 : index
    %245 = vector.load %arg8[%c8_70, %c0_71] : memref<16x256xf32, #tpu.memory_space<vmem>>, vector<2x128xf32>
    %cst_72 = arith.constant dense<0.000000e+00> : vector<2x128xf32>
    %246 = tpu.matmul %217, %7, %cst_72 {dimension_numbers = #tpu.dot_dimension_numbers<[1], [0], [0], [1], [0, 0, 1, 1], [], []>} : vector<2x32xf32>, vector<32x128xf32>, vector<2x128xf32> -> vector<2x128xf32>
    %247 = arith.addf %245, %246 : vector<2x128xf32>
    %c6_73 = arith.constant 6 : index
    %c128_74 = arith.constant 128 : index
    %248 = vector.load %arg8[%c6_73, %c128_74] : memref<16x256xf32, #tpu.memory_space<vmem>>, vector<2x128xf32>
    %cst_75 = arith.constant dense<0.000000e+00> : vector<2x128xf32>
    %249 = tpu.matmul %242, %8, %cst_75 {dimension_numbers = #tpu.dot_dimension_numbers<[1], [0], [0], [1], [0, 0, 1, 1], [], []>} : vector<2x32xf32>, vector<32x128xf32>, vector<2x128xf32> -> vector<2x128xf32>
    %250 = arith.addf %248, %249 : vector<2x128xf32>
    %251 = vector.extract_strided_slice %247 {offsets = [0, 0], sizes = [2, 32], strides = [1, 1]} : vector<2x128xf32> to vector<2x32xf32>
    %252 = arith.negf %251 : vector<2x32xf32>
    %253 = math.exp %252 : vector<2x32xf32>
    %cst_76 = arith.constant 1.000000e+00 : f32
    %254 = vector.broadcast %cst_76 : f32 to vector<2x32xf32>
    %255 = arith.addf %254, %253 : vector<2x32xf32>
    %256 = arith.divf %254, %255 : vector<2x32xf32>
    %257 = vector.extract_strided_slice %247 {offsets = [0, 32], sizes = [2, 32], strides = [1, 1]} : vector<2x128xf32> to vector<2x32xf32>
    %258 = arith.negf %257 : vector<2x32xf32>
    %259 = math.exp %258 : vector<2x32xf32>
    %cst_77 = arith.constant 1.000000e+00 : f32
    %260 = vector.broadcast %cst_77 : f32 to vector<2x32xf32>
    %261 = arith.addf %260, %259 : vector<2x32xf32>
    %262 = arith.divf %260, %261 : vector<2x32xf32>
    %263 = vector.extract_strided_slice %247 {offsets = [0, 64], sizes = [2, 32], strides = [1, 1]} : vector<2x128xf32> to vector<2x32xf32>
    %264 = math.tanh %263 : vector<2x32xf32>
    %265 = vector.extract_strided_slice %247 {offsets = [0, 96], sizes = [2, 32], strides = [1, 1]} : vector<2x128xf32> to vector<2x32xf32>
    %266 = arith.negf %265 : vector<2x32xf32>
    %267 = math.exp %266 : vector<2x32xf32>
    %cst_78 = arith.constant 1.000000e+00 : f32
    %268 = vector.broadcast %cst_78 : f32 to vector<2x32xf32>
    %269 = arith.addf %268, %267 : vector<2x32xf32>
    %270 = arith.divf %268, %269 : vector<2x32xf32>
    %271 = arith.mulf %262, %215 : vector<2x32xf32>
    %272 = arith.mulf %256, %264 : vector<2x32xf32>
    %273 = arith.addf %271, %272 : vector<2x32xf32>
    %274 = math.tanh %273 : vector<2x32xf32>
    %275 = arith.mulf %270, %274 : vector<2x32xf32>
    %276 = vector.extract_strided_slice %250 {offsets = [0, 0], sizes = [2, 32], strides = [1, 1]} : vector<2x128xf32> to vector<2x32xf32>
    %277 = arith.negf %276 : vector<2x32xf32>
    %278 = math.exp %277 : vector<2x32xf32>
    %cst_79 = arith.constant 1.000000e+00 : f32
    %279 = vector.broadcast %cst_79 : f32 to vector<2x32xf32>
    %280 = arith.addf %279, %278 : vector<2x32xf32>
    %281 = arith.divf %279, %280 : vector<2x32xf32>
    %282 = vector.extract_strided_slice %250 {offsets = [0, 32], sizes = [2, 32], strides = [1, 1]} : vector<2x128xf32> to vector<2x32xf32>
    %283 = arith.negf %282 : vector<2x32xf32>
    %284 = math.exp %283 : vector<2x32xf32>
    %cst_80 = arith.constant 1.000000e+00 : f32
    %285 = vector.broadcast %cst_80 : f32 to vector<2x32xf32>
    %286 = arith.addf %285, %284 : vector<2x32xf32>
    %287 = arith.divf %285, %286 : vector<2x32xf32>
    %288 = vector.extract_strided_slice %250 {offsets = [0, 64], sizes = [2, 32], strides = [1, 1]} : vector<2x128xf32> to vector<2x32xf32>
    %289 = math.tanh %288 : vector<2x32xf32>
    %290 = vector.extract_strided_slice %250 {offsets = [0, 96], sizes = [2, 32], strides = [1, 1]} : vector<2x128xf32> to vector<2x32xf32>
    %291 = arith.negf %290 : vector<2x32xf32>
    %292 = math.exp %291 : vector<2x32xf32>
    %cst_81 = arith.constant 1.000000e+00 : f32
    %293 = vector.broadcast %cst_81 : f32 to vector<2x32xf32>
    %294 = arith.addf %293, %292 : vector<2x32xf32>
    %295 = arith.divf %293, %294 : vector<2x32xf32>
    %296 = arith.mulf %287, %240 : vector<2x32xf32>
    %297 = arith.mulf %281, %289 : vector<2x32xf32>
    %298 = arith.addf %296, %297 : vector<2x32xf32>
    %299 = math.tanh %298 : vector<2x32xf32>
    %300 = arith.mulf %295, %299 : vector<2x32xf32>
    %c8_82 = arith.constant 8 : index
    %c0_83 = arith.constant 0 : index
    %301 = vector.load %arg6[%c8_82, %c0_83] : memref<16x64xf32, #tpu.memory_space<vmem>>, vector<2x32xf32>
    tpu.vector_store %arg6[%c8_82, %c0_83], %275 {strides = array<i32>} : memref<16x64xf32, #tpu.memory_space<vmem>>, vector<2x32xf32>,
    %c6_84 = arith.constant 6 : index
    %c32_85 = arith.constant 32 : index
    %302 = vector.load %arg6[%c6_84, %c32_85] : memref<16x64xf32, #tpu.memory_space<vmem>>, vector<2x32xf32>
    tpu.vector_store %arg6[%c6_84, %c32_85], %300 {strides = array<i32>} : memref<16x64xf32, #tpu.memory_space<vmem>>, vector<2x32xf32>,
    %c10_86 = arith.constant 10 : index
    %c0_87 = arith.constant 0 : index
    %303 = vector.load %arg8[%c10_86, %c0_87] : memref<16x256xf32, #tpu.memory_space<vmem>>, vector<2x128xf32>
    %cst_88 = arith.constant dense<0.000000e+00> : vector<2x128xf32>
    %304 = tpu.matmul %275, %7, %cst_88 {dimension_numbers = #tpu.dot_dimension_numbers<[1], [0], [0], [1], [0, 0, 1, 1], [], []>} : vector<2x32xf32>, vector<32x128xf32>, vector<2x128xf32> -> vector<2x128xf32>
    %305 = arith.addf %303, %304 : vector<2x128xf32>
    %c4_89 = arith.constant 4 : index
    %c128_90 = arith.constant 128 : index
    %306 = vector.load %arg8[%c4_89, %c128_90] : memref<16x256xf32, #tpu.memory_space<vmem>>, vector<2x128xf32>
    %cst_91 = arith.constant dense<0.000000e+00> : vector<2x128xf32>
    %307 = tpu.matmul %300, %8, %cst_91 {dimension_numbers = #tpu.dot_dimension_numbers<[1], [0], [0], [1], [0, 0, 1, 1], [], []>} : vector<2x32xf32>, vector<32x128xf32>, vector<2x128xf32> -> vector<2x128xf32>
    %308 = arith.addf %306, %307 : vector<2x128xf32>
    %309 = vector.extract_strided_slice %305 {offsets = [0, 0], sizes = [2, 32], strides = [1, 1]} : vector<2x128xf32> to vector<2x32xf32>
    %310 = arith.negf %309 : vector<2x32xf32>
    %311 = math.exp %310 : vector<2x32xf32>
    %cst_92 = arith.constant 1.000000e+00 : f32
    %312 = vector.broadcast %cst_92 : f32 to vector<2x32xf32>
    %313 = arith.addf %312, %311 : vector<2x32xf32>
    %314 = arith.divf %312, %313 : vector<2x32xf32>
    %315 = vector.extract_strided_slice %305 {offsets = [0, 32], sizes = [2, 32], strides = [1, 1]} : vector<2x128xf32> to vector<2x32xf32>
    %316 = arith.negf %315 : vector<2x32xf32>
    %317 = math.exp %316 : vector<2x32xf32>
    %cst_93 = arith.constant 1.000000e+00 : f32
    %318 = vector.broadcast %cst_93 : f32 to vector<2x32xf32>
    %319 = arith.addf %318, %317 : vector<2x32xf32>
    %320 = arith.divf %318, %319 : vector<2x32xf32>
    %321 = vector.extract_strided_slice %305 {offsets = [0, 64], sizes = [2, 32], strides = [1, 1]} : vector<2x128xf32> to vector<2x32xf32>
    %322 = math.tanh %321 : vector<2x32xf32>
    %323 = vector.extract_strided_slice %305 {offsets = [0, 96], sizes = [2, 32], strides = [1, 1]} : vector<2x128xf32> to vector<2x32xf32>
    %324 = arith.negf %323 : vector<2x32xf32>
    %325 = math.exp %324 : vector<2x32xf32>
    %cst_94 = arith.constant 1.000000e+00 : f32
    %326 = vector.broadcast %cst_94 : f32 to vector<2x32xf32>
    %327 = arith.addf %326, %325 : vector<2x32xf32>
    %328 = arith.divf %326, %327 : vector<2x32xf32>
    %329 = arith.mulf %320, %273 : vector<2x32xf32>
    %330 = arith.mulf %314, %322 : vector<2x32xf32>
    %331 = arith.addf %329, %330 : vector<2x32xf32>
    %332 = math.tanh %331 : vector<2x32xf32>
    %333 = arith.mulf %328, %332 : vector<2x32xf32>
    %334 = vector.extract_strided_slice %308 {offsets = [0, 0], sizes = [2, 32], strides = [1, 1]} : vector<2x128xf32> to vector<2x32xf32>
    %335 = arith.negf %334 : vector<2x32xf32>
    %336 = math.exp %335 : vector<2x32xf32>
    %cst_95 = arith.constant 1.000000e+00 : f32
    %337 = vector.broadcast %cst_95 : f32 to vector<2x32xf32>
    %338 = arith.addf %337, %336 : vector<2x32xf32>
    %339 = arith.divf %337, %338 : vector<2x32xf32>
    %340 = vector.extract_strided_slice %308 {offsets = [0, 32], sizes = [2, 32], strides = [1, 1]} : vector<2x128xf32> to vector<2x32xf32>
    %341 = arith.negf %340 : vector<2x32xf32>
    %342 = math.exp %341 : vector<2x32xf32>
    %cst_96 = arith.constant 1.000000e+00 : f32
    %343 = vector.broadcast %cst_96 : f32 to vector<2x32xf32>
    %344 = arith.addf %343, %342 : vector<2x32xf32>
    %345 = arith.divf %343, %344 : vector<2x32xf32>
    %346 = vector.extract_strided_slice %308 {offsets = [0, 64], sizes = [2, 32], strides = [1, 1]} : vector<2x128xf32> to vector<2x32xf32>
    %347 = math.tanh %346 : vector<2x32xf32>
    %348 = vector.extract_strided_slice %308 {offsets = [0, 96], sizes = [2, 32], strides = [1, 1]} : vector<2x128xf32> to vector<2x32xf32>
    %349 = arith.negf %348 : vector<2x32xf32>
    %350 = math.exp %349 : vector<2x32xf32>
    %cst_97 = arith.constant 1.000000e+00 : f32
    %351 = vector.broadcast %cst_97 : f32 to vector<2x32xf32>
    %352 = arith.addf %351, %350 : vector<2x32xf32>
    %353 = arith.divf %351, %352 : vector<2x32xf32>
    %354 = arith.mulf %345, %298 : vector<2x32xf32>
    %355 = arith.mulf %339, %347 : vector<2x32xf32>
    %356 = arith.addf %354, %355 : vector<2x32xf32>
    %357 = math.tanh %356 : vector<2x32xf32>
    %358 = arith.mulf %353, %357 : vector<2x32xf32>
    %c10_98 = arith.constant 10 : index
    %c0_99 = arith.constant 0 : index
    %359 = vector.load %arg6[%c10_98, %c0_99] : memref<16x64xf32, #tpu.memory_space<vmem>>, vector<2x32xf32>
    tpu.vector_store %arg6[%c10_98, %c0_99], %333 {strides = array<i32>} : memref<16x64xf32, #tpu.memory_space<vmem>>, vector<2x32xf32>,
    %c4_100 = arith.constant 4 : index
    %c32_101 = arith.constant 32 : index
    %360 = vector.load %arg6[%c4_100, %c32_101] : memref<16x64xf32, #tpu.memory_space<vmem>>, vector<2x32xf32>
    tpu.vector_store %arg6[%c4_100, %c32_101], %358 {strides = array<i32>} : memref<16x64xf32, #tpu.memory_space<vmem>>, vector<2x32xf32>,
    %c12_102 = arith.constant 12 : index
    %c0_103 = arith.constant 0 : index
    %361 = vector.load %arg8[%c12_102, %c0_103] : memref<16x256xf32, #tpu.memory_space<vmem>>, vector<2x128xf32>
    %cst_104 = arith.constant dense<0.000000e+00> : vector<2x128xf32>
    %362 = tpu.matmul %333, %7, %cst_104 {dimension_numbers = #tpu.dot_dimension_numbers<[1], [0], [0], [1], [0, 0, 1, 1], [], []>} : vector<2x32xf32>, vector<32x128xf32>, vector<2x128xf32> -> vector<2x128xf32>
    %363 = arith.addf %361, %362 : vector<2x128xf32>
    %c2_105 = arith.constant 2 : index
    %c128_106 = arith.constant 128 : index
    %364 = vector.load %arg8[%c2_105, %c128_106] : memref<16x256xf32, #tpu.memory_space<vmem>>, vector<2x128xf32>
    %cst_107 = arith.constant dense<0.000000e+00> : vector<2x128xf32>
    %365 = tpu.matmul %358, %8, %cst_107 {dimension_numbers = #tpu.dot_dimension_numbers<[1], [0], [0], [1], [0, 0, 1, 1], [], []>} : vector<2x32xf32>, vector<32x128xf32>, vector<2x128xf32> -> vector<2x128xf32>
    %366 = arith.addf %364, %365 : vector<2x128xf32>
    %367 = vector.extract_strided_slice %363 {offsets = [0, 0], sizes = [2, 32], strides = [1, 1]} : vector<2x128xf32> to vector<2x32xf32>
    %368 = arith.negf %367 : vector<2x32xf32>
    %369 = math.exp %368 : vector<2x32xf32>
    %cst_108 = arith.constant 1.000000e+00 : f32
    %370 = vector.broadcast %cst_108 : f32 to vector<2x32xf32>
    %371 = arith.addf %370, %369 : vector<2x32xf32>
    %372 = arith.divf %370, %371 : vector<2x32xf32>
    %373 = vector.extract_strided_slice %363 {offsets = [0, 32], sizes = [2, 32], strides = [1, 1]} : vector<2x128xf32> to vector<2x32xf32>
    %374 = arith.negf %373 : vector<2x32xf32>
    %375 = math.exp %374 : vector<2x32xf32>
    %cst_109 = arith.constant 1.000000e+00 : f32
    %376 = vector.broadcast %cst_109 : f32 to vector<2x32xf32>
    %377 = arith.addf %376, %375 : vector<2x32xf32>
    %378 = arith.divf %376, %377 : vector<2x32xf32>
    %379 = vector.extract_strided_slice %363 {offsets = [0, 64], sizes = [2, 32], strides = [1, 1]} : vector<2x128xf32> to vector<2x32xf32>
    %380 = math.tanh %379 : vector<2x32xf32>
    %381 = vector.extract_strided_slice %363 {offsets = [0, 96], sizes = [2, 32], strides = [1, 1]} : vector<2x128xf32> to vector<2x32xf32>
    %382 = arith.negf %381 : vector<2x32xf32>
    %383 = math.exp %382 : vector<2x32xf32>
    %cst_110 = arith.constant 1.000000e+00 : f32
    %384 = vector.broadcast %cst_110 : f32 to vector<2x32xf32>
    %385 = arith.addf %384, %383 : vector<2x32xf32>
    %386 = arith.divf %384, %385 : vector<2x32xf32>
    %387 = arith.mulf %378, %331 : vector<2x32xf32>
    %388 = arith.mulf %372, %380 : vector<2x32xf32>
    %389 = arith.addf %387, %388 : vector<2x32xf32>
    %390 = math.tanh %389 : vector<2x32xf32>
    %391 = arith.mulf %386, %390 : vector<2x32xf32>
    %392 = vector.extract_strided_slice %366 {offsets = [0, 0], sizes = [2, 32], strides = [1, 1]} : vector<2x128xf32> to vector<2x32xf32>
    %393 = arith.negf %392 : vector<2x32xf32>
    %394 = math.exp %393 : vector<2x32xf32>
    %cst_111 = arith.constant 1.000000e+00 : f32
    %395 = vector.broadcast %cst_111 : f32 to vector<2x32xf32>
    %396 = arith.addf %395, %394 : vector<2x32xf32>
    %397 = arith.divf %395, %396 : vector<2x32xf32>
    %398 = vector.extract_strided_slice %366 {offsets = [0, 32], sizes = [2, 32], strides = [1, 1]} : vector<2x128xf32> to vector<2x32xf32>
    %399 = arith.negf %398 : vector<2x32xf32>
    %400 = math.exp %399 : vector<2x32xf32>
    %cst_112 = arith.constant 1.000000e+00 : f32
    %401 = vector.broadcast %cst_112 : f32 to vector<2x32xf32>
    %402 = arith.addf %401, %400 : vector<2x32xf32>
    %403 = arith.divf %401, %402 : vector<2x32xf32>
    %404 = vector.extract_strided_slice %366 {offsets = [0, 64], sizes = [2, 32], strides = [1, 1]} : vector<2x128xf32> to vector<2x32xf32>
    %405 = math.tanh %404 : vector<2x32xf32>
    %406 = vector.extract_strided_slice %366 {offsets = [0, 96], sizes = [2, 32], strides = [1, 1]} : vector<2x128xf32> to vector<2x32xf32>
    %407 = arith.negf %406 : vector<2x32xf32>
    %408 = math.exp %407 : vector<2x32xf32>
    %cst_113 = arith.constant 1.000000e+00 : f32
    %409 = vector.broadcast %cst_113 : f32 to vector<2x32xf32>
    %410 = arith.addf %409, %408 : vector<2x32xf32>
    %411 = arith.divf %409, %410 : vector<2x32xf32>
    %412 = arith.mulf %403, %356 : vector<2x32xf32>
    %413 = arith.mulf %397, %405 : vector<2x32xf32>
    %414 = arith.addf %412, %413 : vector<2x32xf32>
    %415 = math.tanh %414 : vector<2x32xf32>
    %416 = arith.mulf %411, %415 : vector<2x32xf32>
    %c12_114 = arith.constant 12 : index
    %c0_115 = arith.constant 0 : index
    %417 = vector.load %arg6[%c12_114, %c0_115] : memref<16x64xf32, #tpu.memory_space<vmem>>, vector<2x32xf32>
    tpu.vector_store %arg6[%c12_114, %c0_115], %391 {strides = array<i32>} : memref<16x64xf32, #tpu.memory_space<vmem>>, vector<2x32xf32>,
    %c2_116 = arith.constant 2 : index
    %c32_117 = arith.constant 32 : index
    %418 = vector.load %arg6[%c2_116, %c32_117] : memref<16x64xf32, #tpu.memory_space<vmem>>, vector<2x32xf32>
    tpu.vector_store %arg6[%c2_116, %c32_117], %416 {strides = array<i32>} : memref<16x64xf32, #tpu.memory_space<vmem>>, vector<2x32xf32>,
    %c14_118 = arith.constant 14 : index
    %c0_119 = arith.constant 0 : index
    %419 = vector.load %arg8[%c14_118, %c0_119] : memref<16x256xf32, #tpu.memory_space<vmem>>, vector<2x128xf32>
    %cst_120 = arith.constant dense<0.000000e+00> : vector<2x128xf32>
    %420 = tpu.matmul %391, %7, %cst_120 {dimension_numbers = #tpu.dot_dimension_numbers<[1], [0], [0], [1], [0, 0, 1, 1], [], []>} : vector<2x32xf32>, vector<32x128xf32>, vector<2x128xf32> -> vector<2x128xf32>
    %421 = arith.addf %419, %420 : vector<2x128xf32>
    %c0_121 = arith.constant 0 : index
    %c128_122 = arith.constant 128 : index
    %422 = vector.load %arg8[%c0_121, %c128_122] : memref<16x256xf32, #tpu.memory_space<vmem>>, vector<2x128xf32>
    %cst_123 = arith.constant dense<0.000000e+00> : vector<2x128xf32>
    %423 = tpu.matmul %416, %8, %cst_123 {dimension_numbers = #tpu.dot_dimension_numbers<[1], [0], [0], [1], [0, 0, 1, 1], [], []>} : vector<2x32xf32>, vector<32x128xf32>, vector<2x128xf32> -> vector<2x128xf32>
    %424 = arith.addf %422, %423 : vector<2x128xf32>
    %425 = vector.extract_strided_slice %421 {offsets = [0, 0], sizes = [2, 32], strides = [1, 1]} : vector<2x128xf32> to vector<2x32xf32>
    %426 = arith.negf %425 : vector<2x32xf32>
    %427 = math.exp %426 : vector<2x32xf32>
    %cst_124 = arith.constant 1.000000e+00 : f32
    %428 = vector.broadcast %cst_124 : f32 to vector<2x32xf32>
    %429 = arith.addf %428, %427 : vector<2x32xf32>
    %430 = arith.divf %428, %429 : vector<2x32xf32>
    %431 = vector.extract_strided_slice %421 {offsets = [0, 32], sizes = [2, 32], strides = [1, 1]} : vector<2x128xf32> to vector<2x32xf32>
    %432 = arith.negf %431 : vector<2x32xf32>
    %433 = math.exp %432 : vector<2x32xf32>
    %cst_125 = arith.constant 1.000000e+00 : f32
    %434 = vector.broadcast %cst_125 : f32 to vector<2x32xf32>
    %435 = arith.addf %434, %433 : vector<2x32xf32>
    %436 = arith.divf %434, %435 : vector<2x32xf32>
    %437 = vector.extract_strided_slice %421 {offsets = [0, 64], sizes = [2, 32], strides = [1, 1]} : vector<2x128xf32> to vector<2x32xf32>
    %438 = math.tanh %437 : vector<2x32xf32>
    %439 = vector.extract_strided_slice %421 {offsets = [0, 96], sizes = [2, 32], strides = [1, 1]} : vector<2x128xf32> to vector<2x32xf32>
    %440 = arith.negf %439 : vector<2x32xf32>
    %441 = math.exp %440 : vector<2x32xf32>
    %cst_126 = arith.constant 1.000000e+00 : f32
    %442 = vector.broadcast %cst_126 : f32 to vector<2x32xf32>
    %443 = arith.addf %442, %441 : vector<2x32xf32>
    %444 = arith.divf %442, %443 : vector<2x32xf32>
    %445 = arith.mulf %436, %389 : vector<2x32xf32>
    %446 = arith.mulf %430, %438 : vector<2x32xf32>
    %447 = arith.addf %445, %446 : vector<2x32xf32>
    %448 = math.tanh %447 : vector<2x32xf32>
    %449 = arith.mulf %444, %448 : vector<2x32xf32>
    %450 = vector.extract_strided_slice %424 {offsets = [0, 0], sizes = [2, 32], strides = [1, 1]} : vector<2x128xf32> to vector<2x32xf32>
    %451 = arith.negf %450 : vector<2x32xf32>
    %452 = math.exp %451 : vector<2x32xf32>
    %cst_127 = arith.constant 1.000000e+00 : f32
    %453 = vector.broadcast %cst_127 : f32 to vector<2x32xf32>
    %454 = arith.addf %453, %452 : vector<2x32xf32>
    %455 = arith.divf %453, %454 : vector<2x32xf32>
    %456 = vector.extract_strided_slice %424 {offsets = [0, 32], sizes = [2, 32], strides = [1, 1]} : vector<2x128xf32> to vector<2x32xf32>
    %457 = arith.negf %456 : vector<2x32xf32>
    %458 = math.exp %457 : vector<2x32xf32>
    %cst_128 = arith.constant 1.000000e+00 : f32
    %459 = vector.broadcast %cst_128 : f32 to vector<2x32xf32>
    %460 = arith.addf %459, %458 : vector<2x32xf32>
    %461 = arith.divf %459, %460 : vector<2x32xf32>
    %462 = vector.extract_strided_slice %424 {offsets = [0, 64], sizes = [2, 32], strides = [1, 1]} : vector<2x128xf32> to vector<2x32xf32>
    %463 = math.tanh %462 : vector<2x32xf32>
    %464 = vector.extract_strided_slice %424 {offsets = [0, 96], sizes = [2, 32], strides = [1, 1]} : vector<2x128xf32> to vector<2x32xf32>
    %465 = arith.negf %464 : vector<2x32xf32>
    %466 = math.exp %465 : vector<2x32xf32>
    %cst_129 = arith.constant 1.000000e+00 : f32
    %467 = vector.broadcast %cst_129 : f32 to vector<2x32xf32>
    %468 = arith.addf %467, %466 : vector<2x32xf32>
    %469 = arith.divf %467, %468 : vector<2x32xf32>
    %470 = arith.mulf %461, %414 : vector<2x32xf32>
    %471 = arith.mulf %455, %463 : vector<2x32xf32>
    %472 = arith.addf %470, %471 : vector<2x32xf32>
    %473 = math.tanh %472 : vector<2x32xf32>
    %474 = arith.mulf %469, %473 : vector<2x32xf32>
    %c14_130 = arith.constant 14 : index
    %c0_131 = arith.constant 0 : index
    %475 = vector.load %arg6[%c14_130, %c0_131] : memref<16x64xf32, #tpu.memory_space<vmem>>, vector<2x32xf32>
    tpu.vector_store %arg6[%c14_130, %c0_131], %449 {strides = array<i32>} : memref<16x64xf32, #tpu.memory_space<vmem>>, vector<2x32xf32>,
    %c0_132 = arith.constant 0 : index
    %c32_133 = arith.constant 32 : index
    %476 = vector.load %arg6[%c0_132, %c32_133] : memref<16x64xf32, #tpu.memory_space<vmem>>, vector<2x32xf32>
    tpu.vector_store %arg6[%c0_132, %c32_133], %474 {strides = array<i32>} : memref<16x64xf32, #tpu.memory_space<vmem>>, vector<2x32xf32>,
    %c0_134 = arith.constant 0 : index
    %c0_135 = arith.constant 0 : index
    %477 = vector.load %arg7[%c0_134, %c0_135] : memref<2x64xf32, #tpu.memory_space<vmem>>, vector<2x32xf32>
    tpu.vector_store %arg7[%c0_134, %c0_135], %449 {strides = array<i32>} : memref<2x64xf32, #tpu.memory_space<vmem>>, vector<2x32xf32>,
    %c0_136 = arith.constant 0 : index
    %c32_137 = arith.constant 32 : index
    %478 = vector.load %arg7[%c0_136, %c32_137] : memref<2x64xf32, #tpu.memory_space<vmem>>, vector<2x32xf32>
    tpu.vector_store %arg7[%c0_136, %c32_137], %474 {strides = array<i32>} : memref<2x64xf32, #tpu.memory_space<vmem>>, vector<2x32xf32>,
    return
  }
  func.func @transform_0(%arg0: i32) -> (i32, i32) {
    %c0_i32 = arith.constant 0 : i32
    %c0_i32_0 = arith.constant 0 : i32
    %c0_i32_1 = arith.constant 0 : i32
    return %c0_i32, %c0_i32_0 : i32, i32
  }
  func.func @transform_1(%arg0: i32) -> (i32, i32) {
    %c0_i32 = arith.constant 0 : i32
    %c0_i32_0 = arith.constant 0 : i32
    %c0_i32_1 = arith.constant 0 : i32
    return %c0_i32, %c0_i32_0 : i32, i32
  }
  func.func @transform_2(%arg0: i32) -> (i32, i32) {
    %c0_i32 = arith.constant 0 : i32
    %c0_i32_0 = arith.constant 0 : i32
    %c0_i32_1 = arith.constant 0 : i32
    return %c0_i32, %c0_i32_0 : i32, i32
  }
  func.func @transform_3(%arg0: i32) -> (i32, i32) {
    %c0_i32 = arith.constant 0 : i32
    %c0_i32_0 = arith.constant 0 : i32
    %c0_i32_1 = arith.constant 0 : i32
    return %c0_i32, %c0_i32_0 : i32, i32
  }
  func.func @transform_4(%arg0: i32) -> (i32, i32) {
    %c0_i32 = arith.constant 0 : i32
    %c0_i32_0 = arith.constant 0 : i32
    %c0_i32_1 = arith.constant 0 : i32
    return %c0_i32, %c0_i32_0 : i32, i32
  }
  func.func @transform_5(%arg0: i32) -> (i32, i32) {
    %c0_i32 = arith.constant 0 : i32
    %c0_i32_0 = arith.constant 0 : i32
    %c0_i32_1 = arith.constant 0 : i32
    return %c0_i32, %c0_i32_0 : i32, i32
  }
  func.func @transform_6(%arg0: i32) -> (i32, i32) {
    %c0_i32 = arith.constant 0 : i32
    %c0_i32_0 = arith.constant 0 : i32
    %c0_i32_1 = arith.constant 0 : i32
    return %c0_i32, %c0_i32_0 : i32, i32
  }
}

</mosaic_0001>

<bundles_post_ra>
// kernel: tpu_custom_call.1
= control target key start
LH: loop header
LB: loop body
LE: loop exit
PB: predicated region body
PF: predicated region fallthrough
CT: control target
= control target key end

     0   :  { %12 = vsyncpa [#allocation4], 0  ;;  %s3139_s0 = inlined_call_operand.hbm [shape: f32[16,32], index: 0, kind: input, shape index: {}]   ;;  %s3140_s1 = inlined_call_operand.hbm [shape: f32[32,256], index: 1, kind: input, shape index: {}]   ;;  %s3141_s2 = inlined_call_operand.hbm [shape: f32[32,128], index: 2, kind: input, shape index: {}]   ;;  %s3142_s3 = inlined_call_operand.hbm [shape: f32[32,128], index: 3, kind: input, shape index: {}]   ;;  %s3143_s4 = inlined_call_operand.vmem [shape: f32[1,256], index: 4, kind: input, shape index: {}]   ;;  %s3144_s5 = inlined_call_operand.hbm [shape: f32[16,64], index: 5, kind: output, shape index: {0}]   ;;  %s3145_s6 = inlined_call_operand.hbm [shape: f32[2,64], index: 6, kind: output, shape index: {1}]  }
   0x1   :  { %13 = vsyncpa [#allocation7], 0 }
   0x2   :  { %14 = vsyncpa [#allocation10], 0 }
   0x3   :  { %15 = vsyncpa [#allocation5], 0 }
   0x4   :  { %16 = vsyncpa [#allocation13], 0  ;;  %s2677_s21 = smov [#allocation6]   ;;  %s2535_s25 = scalar_lea.hbm %s3140_s1, 1024 }
   0x5   :  { %s34_s22 = sshll.u32 %s2677_s21, 4  ;;  %p2536_p0 = scmp.ne.s32.totalorder %s3140_s1, %s2535_s25  ;;  %s35_s22 = int_to_ptr.vmem [resolvable:$true] %s34_s22 }
   0x6   :  { %p2539_p1 = scmp.lt.u32.totalorder %s2535_s25, %s3140_s1 }
   0x8   :  { %p2541_p2 = pnand %p2539_p1, %p2536_p0 }
   0xa   :  { %2544 = shalt.err (!%p2541_p2)
}
   0xb   :  { %s2545_s30 = scalar_lea.vmem %s35_s22, 1024  ;;  %p2550_p4 = scmp.lt.s32.totalorder %s35_s22, %s35_s22 }
   0xc   :  { %p2546_p3 = scmp.ne.s32.totalorder %s35_s22, %s2545_s30  ;;  %p2551_p5 = scmp.lt.s32.totalorder %s2545_s30, %s2545_s30 }
   0xe   :  { %p2552_p6 = por %p2551_p5, %p2550_p4 }
  0x10   :  { %p2553_p7 = pnand %p2552_p6, %p2546_p3 }
  0x12   :  { %2556 = shalt.err (!%p2553_p7)
}
  0x13   :  { %s2678_s7 = smov 256   ;;  %s2679_s8 = smov 16  }
  0x14   :  { %40 = dma.hbm_to_vmem [thread:$0]  %s3140_s1, 1024, %s35_s22, [#allocation7], %s2678_s7, %s2678_s7, %s2679_s8  }
  0x15   :  { %s2680_s11 = smov [#allocation3]   ;;  %s2557_s15 = scalar_lea.hbm %s3139_s0, 256 }
  0x16   :  { %s22_s12 = sshll.u32 %s2680_s11, 4  ;;  %p2558_p8 = scmp.ne.s32.totalorder %s3139_s0, %s2557_s15  ;;  %s23_s12 = int_to_ptr.vmem [resolvable:$true] %s22_s12 }
  0x17   :  { %p2561_p9 = scmp.lt.u32.totalorder %s2557_s15, %s3139_s0 }
  0x19   :  { %p2563_p10 = pnand %p2561_p9, %p2558_p8 }
  0x1b   :  { %2566 = shalt.err (!%p2563_p10)
}
  0x1c   :  { %s2567_s20 = scalar_lea.vmem %s23_s12, 256  ;;  %p2572_p12 = scmp.lt.s32.totalorder %s23_s12, %s23_s12 }
  0x1d   :  { %p2568_p11 = scmp.ne.s32.totalorder %s23_s12, %s2567_s20  ;;  %p2573_p13 = scmp.lt.s32.totalorder %s2567_s20, %s2567_s20 }
  0x1f   :  { %p2574_p0 = por %p2573_p13, %p2572_p12 }
  0x21   :  { %p2575_p1 = pnand %p2574_p0, %p2568_p11 }
  0x23   :  { %2578 = shalt.err (!%p2575_p1)
}
  0x24   :  { %s2681_s1 = smov 128   ;;  %s2682_s21 = smov 8  }
  0x25   :  { %28 = dma.hbm_to_vmem [thread:$0]  %s3139_s0, 256, %s23_s12, [#allocation4], %s2681_s1, %s2681_s1, %s2682_s21  }
  0x26   :  { %s2683_s24 = smov [#allocation8]   ;;  %s2684_s26 = smov [#allocation9]  }
  0x27   :  { %s46_s25 = sshll.u32 %s2683_s24, 4  ;;  %s58_s27 = sshll.u32 %s2684_s26, 4  ;;  %s47_s25 = int_to_ptr.vmem [resolvable:$true] %s46_s25  ;;  %s2754_s27 = int_to_ptr.vmem [resolvable:$true] %s58_s27 }
  0x28   :  { %s2579_s30 = scalar_lea.hbm %s3141_s2, 512 }
  0x29   :  { %p2580_p2 = scmp.ne.s32.totalorder %s3141_s2, %s2579_s30  ;;  %p2583_p3 = scmp.lt.u32.totalorder %s2579_s30, %s3141_s2 }
  0x2b   :  { %p2585_p4 = pnand %p2583_p3, %p2580_p2 }
  0x2d   :  { %2588 = shalt.err (!%p2585_p4)
}
  0x2e   :  { %s2589_s0 = scalar_lea.vmem %s47_s25, 512  ;;  %p2594_p6 = scmp.lt.s32.totalorder %s47_s25, %s47_s25 }
  0x2f   :  { %p2590_p5 = scmp.ne.s32.totalorder %s47_s25, %s2589_s0  ;;  %p2595_p7 = scmp.lt.s32.totalorder %s2589_s0, %s2589_s0 }
  0x31   :  { %p2596_p8 = por %p2595_p7, %p2594_p6 }
  0x33   :  { %p2597_p9 = pnand %p2596_p8, %p2590_p5 }
  0x35   :  { %2600 = shalt.err (!%p2597_p9)
}
  0x36   :  { %52 = dma.hbm_to_vmem [thread:$0]  %s3141_s2, 512, %s47_s25, [#allocation7], %s2681_s1, %s2681_s1, %s2682_s21  }
  0x37   :  { %s2601_s15 = scalar_lea.hbm %s3142_s3, 512 }
  0x38   :  { %p2602_p10 = scmp.ne.s32.totalorder %s3142_s3, %s2601_s15  ;;  %p2605_p11 = scmp.lt.u32.totalorder %s2601_s15, %s3142_s3 }
  0x3a   :  { %p2607_p12 = pnand %p2605_p11, %p2602_p10 }
  0x3c   :  { %2610 = shalt.err (!%p2607_p12)
}
  0x3d   :  { %s2611_s20 = scalar_lea.vmem %s2754_s27, 512  ;;  %p2616_p0 = scmp.lt.s32.totalorder %s2754_s27, %s2754_s27 }
  0x3e   :  { %p2612_p13 = scmp.ne.s32.totalorder %s2754_s27, %s2611_s20  ;;  %p2617_p1 = scmp.lt.s32.totalorder %s2611_s20, %s2611_s20 }
  0x40   :  { %p2618_p2 = por %p2617_p1, %p2616_p0 }
  0x42   :  { %p2619_p3 = pnand %p2618_p2, %p2612_p13 }
  0x44   :  { %2622 = shalt.err (!%p2619_p3)
}
  0x45   :  { %64 = dma.hbm_to_vmem [thread:$0]  %s3142_s3, 512, %s2754_s27, [#allocation10], %s2681_s1, %s2681_s1, %s2682_s21  }
  0x46   :  { %2667 = dma.done.wait [#allocation4], 256  }
  0x47   :  { %2668 = vsyncadd [#allocation4], 4294967040 }
  0x48   :  { %2669 = dma.done.wait [#allocation7], 1536  }
  0x49   :  { %2670 = vsyncadd [#allocation7], 4294965760 }
  0x4a   :  { %2671 = dma.done.wait [#allocation10], 512  }
  0x4b   :  { %2672 = vsyncadd [#allocation10], 4294966784  ;;  %v2685_v0 = vmov 0.0   ;;  %v2686_v1 = vmov 0.0|0.0   ;;  %vm2687_vm0 = vmmov 0   ;;  %v82_v2 = vld [vmem:[#allocation6 + $0x8] sm:$0xff]  ;;  %v91_v28 = vlaneseq }
  0x4c   :  { %172 = vmatprep.mubr.f32.mxu0 %v2685_v0  ;;  %2296 = vmatprep.subr.bf16.mxu1 %v2686_v1  ;;  %v84_v3 = vld [vmem:[#allocation6 + $0x18] sm:$0xff]  ;;  %v81_v4 = vld [vmem:[#allocation6] sm:$0xff]  ;;  %v83_v6 = vld [vmem:[#allocation6 + $0x10] sm:$0xff]  ;;  %vm101_vm1 = vcmask 261120   ;;  %s2689_s24 = smov 32   ;;  %vm399_vm2 = vcmask 254976  }
  0x4d   :  { %2120 = vmatprep.mubr.msk.f32.mxu1 %vm2687_vm0, %v2685_v0  ;;  %v2288_v5 = vpack.c.bf16 %v84_v3, %v82_v2  ;;  %v86_v7 = vld [vmem:[#allocation6 + $0x28] sm:$0xff]  ;;  %v88_v8 = vld [vmem:[#allocation6 + $0x38] sm:$0xff]  ;;  %v2290_v9 = vpack.c.bf16 %v83_v6, %v81_v4  ;;  %v85_v11 = vld [vmem:[#allocation6 + $0x20] sm:$0xff]  ;;  %v92_v29 = vshrl.u32 %v91_v28, 7  ;;  %vm405_vm3 = vcmask 523526   ;;  %s2690_s25 = smov [#allocation11]  }
  0x4e   :  { %v2292_v10 = vpack.c.bf16 %v88_v8, %v86_v7  ;;  %v87_v12 = vld [vmem:[#allocation6 + $0x30] sm:$0xff]  ;;  %v189_v13 = vld [vmem:[#allocation8] sm:$0xff]  ;;  %v190_v14 = vld [vmem:[#allocation8 + $0x8] sm:$0xff]  ;;  %vm628_vm4 = vcmask 521476   ;;  %vm622_vm5 = vcmask 257026   ;;  %vm854_vm6 = vcmask 519426  }
  0x4f   :  { %2289 = vmatprep.subr.bf16.mxu0 %v2288_v5  ;;  %v2294_v15 = vpack.c.bf16 %v87_v12, %v85_v11  ;;  %v2795_v16 = vpack.c.bf16 %v190_v14, %v189_v13  ;;  %v191_v17 = vld [vmem:[#allocation8 + $0x10] sm:$0xff]  ;;  %v193_v18 = vld [vmem:[#allocation9] sm:$0xff]  ;;  %v194_v19 = vld [vmem:[#allocation9 + $0x8] sm:$0xff]  ;;  %v93_v30 = vsub.s32 0, %v92_v29  ;;  %v97_v32 = vsub.s32 1, %v92_v29  ;;  %s1972_s26 = sshll.u32 %s2690_s25, 4  ;;  %s1973_s26 = int_to_ptr.vmem [resolvable:$true] %s1972_s26 }
  0x50   :  { %2291 = vmatpush1.bf16.msra.mxu0 %v2290_v9  ;;  %v192_v20 = vld [vmem:[#allocation8 + $0x18] sm:$0xff]  ;;  %v79_v22 = vld [vmem:[#allocation3] sm:$0xff]  ;;  %v2801_v23 = vpack.c.bf16 %v194_v19, %v193_v18  ;;  %vm848_vm7 = vcmask 259076   ;;  %vm1077_vm8 = vcmask 517376   ;;  %vm1071_vm9 = vcmask 261126   ;;  %s2691_s27 = smov [#allocation12]   ;;  %p2628_p5 = scmp.lt.s32.totalorder %s1973_s26, %s1973_s26 }
  0x51   :  { %2293 = vmatprep.subr.bf16.mxu0 %v2292_v10  ;;  %2298 = vmatpush3.bf16.msra.mxu1 %v2795_v16  ;;  %v2798_v21 = vpack.c.bf16 %v192_v20, %v191_v17  ;;  %v195_v24 = vld [vmem:[#allocation9 + $0x10] sm:$0xff]  ;;  %v196_v25 = vld [vmem:[#allocation9 + $0x18] sm:$0xff]  ;;  %s1985_s28 = sshll.u32 %s2691_s27, 4  ;;  %s2623_s29 = scalar_lea.vmem %s1973_s26, 256  ;;  %s1986_s28 = int_to_ptr.vmem [resolvable:$true] %s1985_s28 }
  0x52   :  { %2299 = vmatprep.subr.bf16.mxu1 %v2686_v1  ;;  %v80_v26 = vld [vmem:[#allocation3 + $0x8] sm:$0xff]  ;;  %v2809_v27 = vpack.c.bf16 %v196_v25, %v195_v24  ;;  %v89_v31 = vld [vmem:[%s3143_s4] sm:$0x3]  ;;  %s2688_s4 = smov 64   ;;  %p2624_p4 = scmp.ne.s32.totalorder %s1973_s26, %s2623_s29 }
  0x53   :  { %v94_v33 = vrot.slane %v89_v31, %v93_v30  ;;  %v98_v34 = vrot.slane %v89_v31, %v97_v32  ;;  %p2629_p6 = scmp.lt.s32.totalorder %s2623_s29, %s2623_s29 }
  0x54   :  { %2295 = vmatpush1.bf16.msra.mxu0 %v2294_v15 }
  0x55   :  { %2302 = vmatprep.subr.bf16.mxu0 %v2686_v1  ;;  %2301 = vmatpush3.bf16.msra.mxu1 %v2798_v21  ;;  %p2630_p7 = por %p2629_p6, %p2628_p5 }
  0x56   :  { %2308 = vmatprep.subr.bf16.mxu1 %v2686_v1 }
  0x57   :  { %2000 = vmatmul.mubr.msk.f32.vlgmr.msra.gmra.mrb[0].mxu0 %vm101_vm1, %v79_v22  ;;  %p2631_p8 = pnand %p2630_p7, %p2624_p4 }
  0x58   :  { %178 = vmatprep.mubr.f32.mxu0 %v2685_v0  ;;  %2304 = vmatpush3.bf16.msra.mxu0 %v2801_v23 }
  0x59   :  { %2305 = vmatprep.subr.bf16.mxu0 %v2686_v1  ;;  %2121 = vmatmul.mubr.f32.vlgmr.msra.gmra.mrb[0].mxu1 %v2685_v0 }
  0x5a   :  { %2310 = vmatpush3.bf16.msra.mxu1 %v2795_v16  ;;  %2142 = vmatprep.mubr.msk.f32.mxu1 %vm2687_vm0, %v2685_v0 }
  0x5b   :  { %2001 = vmatmul.mubr.msk.f32.gmra.mrb[2].mxu0 %vm101_vm1, %v80_v26  ;;  %2311 = vmatprep.subr.bf16.mxu1 %v2686_v1 }
  0x5c   :  { %2307 = vmatpush3.bf16.msra.mxu0 %v2809_v27  ;;  %2131 = vmatprep.mubr.msk.f32.mxu0 %vm2687_vm0, %v2685_v0 }
  0x5d   :  { %2314 = vmatprep.subr.bf16.mxu0 %v2686_v1 }
  0x5e   :  { %2313 = vmatpush3.bf16.msra.mxu1 %v2798_v21 }
  0x5f   :  { %2132 = vmatmul.mubr.f32.vlgmr.msra.gmra.mrb[4].mxu0 %v2685_v0  ;;  %2320 = vmatprep.subr.bf16.mxu1 %v2686_v1 }
  0x60   :  { %2316 = vmatpush3.bf16.msra.mxu0 %v2801_v23  ;;  %2153 = vmatprep.mubr.msk.f32.mxu0 %vm2687_vm0, %v2685_v0 }
  0x61   :  { %2317 = vmatprep.subr.bf16.mxu0 %v2686_v1 }
  0x64   :  { %2319 = vmatpush3.bf16.msra.mxu0 %v2809_v27 }
  0x65   :  { %2326 = vmatprep.subr.bf16.mxu0 %v2686_v1 }
 0x12a   :  { %v174_v35 = vpop.f32.mrb[0].mxu0 }
 0x12b   :  { %v175_v36 = vadd.f32 %v174_v35, %v94_v33  ;;  %v176_v37 = vpop.f32.mrb[1].mxu0 }
 0x12c   :  { %v177_v38 = vadd.f32 %v176_v37, %v98_v34  ;;  %v267_v39 = vpop.f32.mrb[0].mxu1 }
 0x12d   :  { %185 = vst [vmem:[#allocation2] sm:$0xff] %v175_v36  ;;  %v2122_v40 = vpop.f32.mrb[1].mxu1 }
 0x12e   :  { %186 = vst [vmem:[#allocation2 + $0x8] sm:$0xff] %v177_v38  ;;  %v180_v41 = vpop.f32.mrb[2].mxu0 }
 0x12f   :  { %v181_v42 = vadd.f32 %v180_v41, %v94_v33  ;;  %v182_v43 = vpop.f32.mrb[3].mxu0 }
 0x130   :  { %v183_v44 = vadd.f32 %v182_v43, %v98_v34 }
 0x131   :  { %187 = vst [vmem:[#allocation2 + $0x10] sm:$0xff] %v181_v42 }
 0x132   :  { %188 = vst [vmem:[#allocation2 + $0x18] sm:$0xff] %v183_v44  ;;  %v339_v45 = vpop.f32.mrb[4].mxu0 }
 0x133   :  { %v2133_v46 = vpop.f32.mrb[5].mxu0  ;;  %v344_v49 = vrot.slane %v339_v45, 2 }
 0x134   :  { %v197_v47 = vld [vmem:[#allocation2] sm:$0x3]  ;;  %v407_v25 = vld [vmem:[#allocation2] sm:$0xc] }
 0x135   :  { %v271_v48 = vadd.f32 %v267_v39, %v197_v47 }
 0x137   :  { %2407 = vtanh.f32 %v271_v48  ;;  %v2002_v54 = vmul.f32 -1.442695, %v271_v48 }
 0x139   :  { %v272_v50 = vld [vmem:[#allocation2 + $0x18] sm:$0xc0]  ;;  %v484_v31 = vld [vmem:[#allocation2 + $0x18] sm:$0x30] }
 0x13a   :  { %v346_v51 = vadd.f32 %v344_v49, %v272_v50 }
 0x13c   :  { %2409 = vtanh.f32 %v346_v51  ;;  %v2003_v55 = vmul.f32 -1.442695, %v346_v51 }
 0x13d   :  { %2411 = vpow2.f32 %v2002_v54 }
 0x13e   :  { %2413 = vpow2.f32 %v2003_v55 }
 0x141   :  { %v2408_v52 = vpop.eup %2407 }
 0x142   :  { %356 = vrot.lane.b32.xlu0 %v2408_v52, %s2688_s4 }
 0x146   :  { %v2410_v53 = vpop.eup %2409 }
 0x147   :  { %380 = vrot.lane.b32.xlu0 %v2410_v53, %s2688_s4  ;;  %v2412_v56 = vpop.eup %2411 }
 0x148   :  { %v350_v57 = vadd.f32 1.0, %v2412_v56  ;;  %v2414_v58 = vpop.eup %2413 }
 0x149   :  { %v374_v59 = vadd.f32 1.0, %v2414_v58 }
 0x14a   :  { %2415 = vrcp.f32 %v350_v57 }
 0x14b   :  { %2417 = vrcp.f32 %v374_v59 }
 0x154   :  { %v2416_v60 = vpop.eup %2415 }
 0x155   :  { %v2418_v63 = vpop.eup %2417  ;;  %v354_v4 = vmul.f32 0.0, %v2416_v60 }
 0x156   :  { %v378_v7 = vmul.f32 0.0, %v2418_v63 }
 0x1b4   :  { %v357_v61 = vpop.permute.xlu0 %356 }
 0x1b5   :  { %v359_v62 = vmul.f32 %v2416_v60, %v357_v61 }
 0x1b7   :  { %361 = vrot.lane.b32.xlu1 %v359_v62, %s2689_s24 }
 0x1b9   :  { %v381_v2 = vpop.permute.xlu0 %380 }
 0x1ba   :  { %v383_v3 = vmul.f32 %v2418_v63, %v381_v2 }
 0x1bc   :  { %385 = vrot.lane.b32.xlu1 %v383_v3, %s2689_s24 }
 0x229   :  { %v362_v5 = vpop.permute.xlu1 %361 }
 0x22a   :  { %v2838_v6 = vadd.f32 %v362_v5, %v354_v4 }
 0x22c   :  { %2419 = vtanh.f32 %v2838_v6  ;;  %v572_v47 = vrot.slane %v2838_v6, 6  ;;  %v630_v6 = vld [vmem:[#allocation2] sm:$0x30] }
 0x22e   :  { %v386_v8 = vpop.permute.xlu1 %385 }
 0x22f   :  { %v2841_v9 = vadd.f32 %v386_v8, %v378_v7 }
 0x231   :  { %2421 = vtanh.f32 %v2841_v9  ;;  %v599_v51 = vrot.slane %v2841_v9, 2 }
 0x236   :  { %v2420_v10 = vpop.eup %2419 }
 0x237   :  { %367 = vrot.lane.b32.xlu0 %v2420_v10, %s2688_s4 }
 0x23b   :  { %v2422_v11 = vpop.eup %2421 }
 0x23c   :  { %391 = vrot.lane.b32.xlu1 %v2422_v11, %s2688_s4  ;;  %v710_v11 = vld [vmem:[#allocation2 + $0x18] sm:$0xc] }
 0x2a9   :  { %v368_v12 = vpop.permute.xlu0 %367 }
 0x2aa   :  { %v370_v13 = vmul.f32 %v2416_v60, %v368_v12 }
 0x2ac   :  { %396 = vrot.lane.b32.xlu0 %v370_v13, %s2689_s24 }
 0x2ae   :  { %v392_v14 = vpop.permute.xlu1 %391 }
 0x2af   :  { %v2847_v15 = vmul.f32 %v2418_v63, %v392_v14 }
 0x2b1   :  { %v485_v17 = vrot.slane %v2847_v15, 6 }
 0x2b3   :  { %486 = vrot.lane.b32.xlu1 %v485_v17, %s2689_s24 }
 0x31e   :  { %v397_v18 = vpop.permute.xlu0 %396 }
 0x31f   :  { %400 = vst.msk [vmem:[#allocation11] sm:$0x3] %vm399_vm2, %v397_v18  ;;  %2143 = vmatmul.mubr.msk.f32.vlgmr.msra.gmra.mrb[2].mxu1 %vm101_vm1, %v397_v18 }
 0x320   :  { %2322 = vmatpush3.bf16.msra.mxu1 %v2795_v16  ;;  %2164 = vmatprep.mubr.msk.f32.mxu1 %vm2687_vm0, %v2685_v0 }
 0x321   :  { %2323 = vmatprep.subr.bf16.mxu1 %v2686_v1 }
 0x324   :  { %2325 = vmatpush3.bf16.msra.mxu1 %v2798_v21 }
 0x325   :  { %v487_v19 = vpop.permute.xlu1 %486  ;;  %2332 = vmatprep.subr.bf16.mxu1 %v2686_v1 }
 0x326   :  { %2154 = vmatmul.mubr.msk.f32.vlgmr.msra.gmra.mrb[6].mxu0 %vm101_vm1, %v487_v19 }
 0x327   :  { %2328 = vmatpush3.bf16.msra.mxu0 %v2801_v23  ;;  %2175 = vmatprep.mubr.msk.f32.mxu0 %vm2687_vm0, %v2685_v0 }
 0x328   :  { %2329 = vmatprep.subr.bf16.mxu0 %v2686_v1 }
 0x32b   :  { %2331 = vmatpush3.bf16.msra.mxu0 %v2809_v27 }
 0x32c   :  { %2338 = vmatprep.subr.bf16.mxu0 %v2686_v1 }
 0x3f2   :  { %v476_v20 = vpop.f32.mrb[2].mxu1 }
 0x3f3   :  { %v481_v22 = vrot.slane %v476_v20, 6  ;;  %v2144_v24 = vpop.f32.mrb[3].mxu1 }
 0x3f5   :  { %v483_v26 = vadd.f32 %v481_v22, %v407_v25 }
 0x3f7   :  { %2423 = vtanh.f32 %v483_v26  ;;  %v2006_v35 = vmul.f32 -1.442695, %v483_v26 }
 0x3f9   :  { %v556_v28 = vpop.f32.mrb[6].mxu0 }
 0x3fa   :  { %v561_v29 = vrot.slane %v556_v28, 4  ;;  %v2155_v30 = vpop.f32.mrb[7].mxu0 }
 0x3fc   :  { %v563_v32 = vadd.f32 %v561_v29, %v484_v31 }
 0x3fe   :  { %2425 = vtanh.f32 %v563_v32  ;;  %v2007_v36 = vmul.f32 -1.442695, %v563_v32 }
 0x3ff   :  { %2427 = vpow2.f32 %v2006_v35 }
 0x400   :  { %2429 = vpow2.f32 %v2007_v36 }
 0x401   :  { %v2424_v33 = vpop.eup %2423 }
 0x402   :  { %576 = vrot.lane.b32.xlu0 %v2424_v33, %s2688_s4 }
 0x408   :  { %v2426_v34 = vpop.eup %2425 }
 0x409   :  { %603 = vrot.lane.b32.xlu1 %v2426_v34, %s2688_s4  ;;  %v2428_v37 = vpop.eup %2427 }
 0x40a   :  { %v567_v38 = vadd.f32 1.0, %v2428_v37  ;;  %v2430_v39 = vpop.eup %2429 }
 0x40b   :  { %v594_v40 = vadd.f32 1.0, %v2430_v39 }
 0x40c   :  { %2431 = vrcp.f32 %v567_v38 }
 0x40d   :  { %2433 = vrcp.f32 %v594_v40 }
 0x416   :  { %v2432_v41 = vpop.eup %2431 }
 0x417   :  { %v2434_v44 = vpop.eup %2433  ;;  %v574_v48 = vmul.f32 %v2432_v41, %v572_v47 }
 0x418   :  { %v601_v52 = vmul.f32 %v2434_v44, %v599_v51 }
 0x474   :  { %v577_v42 = vpop.permute.xlu0 %576 }
 0x475   :  { %v579_v43 = vmul.f32 %v2432_v41, %v577_v42 }
 0x477   :  { %581 = vrot.lane.b32.xlu0 %v579_v43, %s2689_s24 }
 0x47b   :  { %v604_v45 = vpop.permute.xlu1 %603 }
 0x47c   :  { %v606_v46 = vmul.f32 %v2434_v44, %v604_v45 }
 0x47e   :  { %608 = vrot.lane.b32.xlu1 %v606_v46, %s2689_s24 }
 0x4e9   :  { %v582_v49 = vpop.permute.xlu0 %581 }
 0x4ea   :  { %v2871_v50 = vadd.f32 %v582_v49, %v574_v48 }
 0x4ec   :  { %2435 = vtanh.f32 %v2871_v50  ;;  %v798_v32 = vrot.slane %v2871_v50, 6 }
 0x4f0   :  { %v609_v53 = vpop.permute.xlu1 %608 }
 0x4f1   :  { %v2875_v54 = vadd.f32 %v609_v53, %v601_v52  ;;  %v856_v53 = vld [vmem:[#allocation2] sm:$0xc0] }
 0x4f3   :  { %2437 = vtanh.f32 %v2875_v54  ;;  %v825_v36 = vrot.slane %v2875_v54, 2 }
 0x4f6   :  { %v2436_v55 = vpop.eup %2435 }
 0x4f7   :  { %587 = vrot.lane.b32.xlu0 %v2436_v55, %s2688_s4  ;;  %v936_v55 = vld [vmem:[#allocation2 + $0x18] sm:$0x3] }
 0x4fd   :  { %v2438_v56 = vpop.eup %2437 }
 0x4fe   :  { %614 = vrot.lane.b32.xlu1 %v2438_v56, %s2688_s4 }
 0x569   :  { %v588_v57 = vpop.permute.xlu0 %587 }
 0x56a   :  { %v2880_v58 = vmul.f32 %v2432_v41, %v588_v57 }
 0x56c   :  { %v631_v59 = vrot.slane %v2880_v58, 2 }
 0x56e   :  { %632 = vrot.lane.b32.xlu0 %v631_v59, %s2689_s24 }
 0x570   :  { %v615_v60 = vpop.permute.xlu1 %614 }
 0x571   :  { %v2884_v61 = vmul.f32 %v2434_v44, %v615_v60 }
 0x573   :  { %v711_v62 = vrot.slane %v2884_v61, 4 }
 0x575   :  { %712 = vrot.lane.b32.xlu1 %v711_v62, %s2689_s24 }
 0x5e0   :  { %v633_v63 = vpop.permute.xlu0 %632 }
 0x5e1   :  { %2165 = vmatmul.mubr.msk.f32.vlgmr.msra.gmra.mrb[4].mxu1 %vm101_vm1, %v633_v63 }
 0x5e2   :  { %2334 = vmatpush3.bf16.msra.mxu1 %v2795_v16  ;;  %2186 = vmatprep.mubr.msk.f32.mxu1 %vm2687_vm0, %v2685_v0 }
 0x5e3   :  { %2335 = vmatprep.subr.bf16.mxu1 %v2686_v1 }
 0x5e6   :  { %2337 = vmatpush3.bf16.msra.mxu1 %v2798_v21 }
 0x5e7   :  { %v713_v2 = vpop.permute.xlu1 %712  ;;  %2344 = vmatprep.subr.bf16.mxu1 %v2686_v1 }
 0x5e8   :  { %2176 = vmatmul.mubr.msk.f32.vlgmr.msra.gmra.mrb[8].mxu0 %vm101_vm1, %v713_v2 }
 0x5e9   :  { %2340 = vmatpush3.bf16.msra.mxu0 %v2801_v23  ;;  %2197 = vmatprep.mubr.msk.f32.mxu0 %vm2687_vm0, %v2685_v0 }
 0x5ea   :  { %2341 = vmatprep.subr.bf16.mxu0 %v2686_v1 }
 0x5ed   :  { %2343 = vmatpush3.bf16.msra.mxu0 %v2809_v27 }
 0x5ee   :  { %2350 = vmatprep.subr.bf16.mxu0 %v2686_v1 }
 0x6b4   :  { %v702_v3 = vpop.f32.mrb[4].mxu1 }
 0x6b5   :  { %v707_v4 = vrot.slane %v702_v3, 4  ;;  %v2166_v5 = vpop.f32.mrb[5].mxu1 }
 0x6b7   :  { %v709_v7 = vadd.f32 %v707_v4, %v630_v6 }
 0x6b9   :  { %2439 = vtanh.f32 %v709_v7  ;;  %v2010_v17 = vmul.f32 -1.442695, %v709_v7 }
 0x6bb   :  { %v782_v8 = vpop.f32.mrb[8].mxu0 }
 0x6bc   :  { %v787_v9 = vrot.slane %v782_v8, 6  ;;  %v2177_v10 = vpop.f32.mrb[9].mxu0 }
 0x6be   :  { %v789_v12 = vadd.f32 %v787_v9, %v710_v11 }
 0x6c0   :  { %2441 = vtanh.f32 %v789_v12  ;;  %v2011_v18 = vmul.f32 -1.442695, %v789_v12 }
 0x6c1   :  { %2443 = vpow2.f32 %v2010_v17 }
 0x6c2   :  { %2445 = vpow2.f32 %v2011_v18 }
 0x6c3   :  { %v2440_v13 = vpop.eup %2439 }
 0x6c4   :  { %802 = vrot.lane.b32.xlu0 %v2440_v13, %s2688_s4 }
 0x6ca   :  { %v2442_v14 = vpop.eup %2441 }
 0x6cb   :  { %829 = vrot.lane.b32.xlu1 %v2442_v14, %s2688_s4  ;;  %v2444_v19 = vpop.eup %2443 }
 0x6cc   :  { %v793_v20 = vadd.f32 1.0, %v2444_v19  ;;  %v2446_v22 = vpop.eup %2445 }
 0x6cd   :  { %v820_v24 = vadd.f32 1.0, %v2446_v22 }
 0x6ce   :  { %2447 = vrcp.f32 %v793_v20 }
 0x6cf   :  { %2449 = vrcp.f32 %v820_v24 }
 0x6d8   :  { %v2448_v25 = vpop.eup %2447 }
 0x6d9   :  { %v2450_v29 = vpop.eup %2449  ;;  %v800_v33 = vmul.f32 %v2448_v25, %v798_v32 }
 0x6da   :  { %v827_v37 = vmul.f32 %v2450_v29, %v825_v36 }
 0x736   :  { %v803_v26 = vpop.permute.xlu0 %802 }
 0x737   :  { %v805_v28 = vmul.f32 %v2448_v25, %v803_v26 }
 0x739   :  { %807 = vrot.lane.b32.xlu0 %v805_v28, %s2689_s24 }
 0x73d   :  { %v830_v30 = vpop.permute.xlu1 %829 }
 0x73e   :  { %v832_v31 = vmul.f32 %v2450_v29, %v830_v30 }
 0x740   :  { %834 = vrot.lane.b32.xlu1 %v832_v31, %s2689_s24 }
 0x7ab   :  { %v808_v34 = vpop.permute.xlu0 %807 }
 0x7ac   :  { %v2907_v35 = vadd.f32 %v808_v34, %v800_v33 }
 0x7ae   :  { %2451 = vtanh.f32 %v2907_v35  ;;  %v1021_v13 = vrot.slane %v2907_v35, 6  ;;  %v1079_v35 = vld [vmem:[#allocation2 + $0x10] sm:$0x3] }
 0x7b2   :  { %v835_v38 = vpop.permute.xlu1 %834 }
 0x7b3   :  { %v2911_v39 = vadd.f32 %v835_v38, %v827_v37 }
 0x7b5   :  { %2453 = vtanh.f32 %v2911_v39  ;;  %v1048_v19 = vrot.slane %v2911_v39, 2 }
 0x7b8   :  { %v2452_v40 = vpop.eup %2451 }
 0x7b9   :  { %813 = vrot.lane.b32.xlu0 %v2452_v40, %s2688_s4 }
 0x7bf   :  { %v2454_v41 = vpop.eup %2453 }
 0x7c0   :  { %840 = vrot.lane.b32.xlu1 %v2454_v41, %s2688_s4 }
 0x82b   :  { %v814_v42 = vpop.permute.xlu0 %813 }
 0x82c   :  { %v2916_v43 = vmul.f32 %v2448_v25, %v814_v42  ;;  %v1156_v42 = vld [vmem:[#allocation2 + $0x8] sm:$0xc0] }
 0x82e   :  { %v857_v44 = vrot.slane %v2916_v43, 4 }
 0x830   :  { %858 = vrot.lane.b32.xlu0 %v857_v44, %s2689_s24 }
 0x832   :  { %v841_v45 = vpop.permute.xlu1 %840 }
 0x833   :  { %v2920_v46 = vmul.f32 %v2450_v29, %v841_v45 }
 0x835   :  { %v937_v47 = vrot.slane %v2920_v46, 2 }
 0x837   :  { %938 = vrot.lane.b32.xlu1 %v937_v47, %s2689_s24 }
 0x8a2   :  { %v859_v48 = vpop.permute.xlu0 %858 }
 0x8a3   :  { %2187 = vmatmul.mubr.msk.f32.vlgmr.msra.gmra.mrb[6].mxu1 %vm101_vm1, %v859_v48 }
 0x8a4   :  { %2346 = vmatpush3.bf16.msra.mxu1 %v2795_v16  ;;  %2208 = vmatprep.mubr.msk.f32.mxu1 %vm2687_vm0, %v2685_v0 }
 0x8a5   :  { %2347 = vmatprep.subr.bf16.mxu1 %v2686_v1 }
 0x8a8   :  { %2349 = vmatpush3.bf16.msra.mxu1 %v2798_v21 }
 0x8a9   :  { %v939_v49 = vpop.permute.xlu1 %938  ;;  %2356 = vmatprep.subr.bf16.mxu1 %v2686_v1 }
 0x8aa   :  { %2198 = vmatmul.mubr.msk.f32.vlgmr.msra.gmra.mrb[10].mxu0 %vm101_vm1, %v939_v49 }
 0x8ab   :  { %2352 = vmatpush3.bf16.msra.mxu0 %v2801_v23  ;;  %2219 = vmatprep.mubr.msk.f32.mxu0 %vm2687_vm0, %v2685_v0 }
 0x8ac   :  { %2353 = vmatprep.subr.bf16.mxu0 %v2686_v1 }
 0x8af   :  { %2355 = vmatpush3.bf16.msra.mxu0 %v2809_v27 }
 0x8b0   :  { %2362 = vmatprep.subr.bf16.mxu0 %v2686_v1 }
 0x976   :  { %v928_v50 = vpop.f32.mrb[6].mxu1 }
 0x977   :  { %v933_v51 = vrot.slane %v928_v50, 2  ;;  %v2188_v52 = vpop.f32.mrb[7].mxu1 }
 0x979   :  { %v935_v54 = vadd.f32 %v933_v51, %v856_v53 }
 0x97b   :  { %2455 = vtanh.f32 %v935_v54  ;;  %v2014_v63 = vmul.f32 -1.442695, %v935_v54 }
 0x97d   :  { %v1008_v56 = vpop.f32.mrb[10].mxu0 }
 0x97e   :  { %v1012_v57 = vadd.f32 %v1008_v56, %v936_v55  ;;  %v2199_v59 = vpop.f32.mrb[11].mxu0 }
 0x980   :  { %2457 = vtanh.f32 %v1012_v57  ;;  %v2015_v2 = vmul.f32 -1.442695, %v1012_v57 }
 0x981   :  { %2459 = vpow2.f32 %v2014_v63 }
 0x982   :  { %2461 = vpow2.f32 %v2015_v2 }
 0x985   :  { %v2456_v60 = vpop.eup %2455 }
 0x986   :  { %1025 = vrot.lane.b32.xlu0 %v2456_v60, %s2688_s4 }
 0x98a   :  { %v2458_v62 = vpop.eup %2457 }
 0x98b   :  { %1052 = vrot.lane.b32.xlu1 %v2458_v62, %s2688_s4  ;;  %v2460_v3 = vpop.eup %2459 }
 0x98c   :  { %v1016_v4 = vadd.f32 1.0, %v2460_v3  ;;  %v2462_v5 = vpop.eup %2461 }
 0x98d   :  { %v1043_v6 = vadd.f32 1.0, %v2462_v5 }
 0x98e   :  { %2463 = vrcp.f32 %v1016_v4 }
 0x98f   :  { %2465 = vrcp.f32 %v1043_v6 }
 0x998   :  { %v2464_v7 = vpop.eup %2463 }
 0x999   :  { %v2466_v10 = vpop.eup %2465  ;;  %v1023_v14 = vmul.f32 %v2464_v7, %v1021_v13 }
 0x99a   :  { %v1050_v20 = vmul.f32 %v2466_v10, %v1048_v19 }
 0x9f8   :  { %v1026_v8 = vpop.permute.xlu0 %1025 }
 0x9f9   :  { %v1028_v9 = vmul.f32 %v2464_v7, %v1026_v8 }
 0x9fb   :  { %1030 = vrot.lane.b32.xlu0 %v1028_v9, %s2689_s24 }
 0x9fd   :  { %v1053_v11 = vpop.permute.xlu1 %1052 }
 0x9fe   :  { %v1055_v12 = vmul.f32 %v2466_v10, %v1053_v11 }
 0xa00   :  { %1057 = vrot.lane.b32.xlu1 %v1055_v12, %s2689_s24 }
 0xa6d   :  { %v1031_v17 = vpop.permute.xlu0 %1030 }
 0xa6e   :  { %v2943_v18 = vadd.f32 %v1031_v17, %v1023_v14 }
 0xa70   :  { %2467 = vtanh.f32 %v2943_v18  ;;  %v1243_v62 = vrot.slane %v2943_v18, 6 }
 0xa72   :  { %v1058_v22 = vpop.permute.xlu1 %1057 }
 0xa73   :  { %v2947_v24 = vadd.f32 %v1058_v22, %v1050_v20 }
 0xa75   :  { %2469 = vtanh.f32 %v2947_v24  ;;  %v1270_v4 = vrot.slane %v2947_v24, 2  ;;  %v1299_v24 = vld [vmem:[#allocation2 + $0x10] sm:$0xc] }
 0xa7a   :  { %v2468_v25 = vpop.eup %2467 }
 0xa7b   :  { %1036 = vrot.lane.b32.xlu0 %v2468_v25, %s2688_s4 }
 0xa7f   :  { %v2470_v26 = vpop.eup %2469 }
 0xa80   :  { %1063 = vrot.lane.b32.xlu1 %v2470_v26, %s2688_s4 }
 0xaed   :  { %v1037_v28 = vpop.permute.xlu0 %1036 }
 0xaee   :  { %v2952_v29 = vmul.f32 %v2464_v7, %v1037_v28 }
 0xaf0   :  { %v1080_v30 = vrot.slane %v2952_v29, 6 }
 0xaf2   :  { %v1064_v31 = vpop.permute.xlu1 %1063  ;;  %1081 = vrot.lane.b32.xlu1 %v1080_v30, %s2689_s24 }
 0xaf3   :  { %v2956_v32 = vmul.f32 %v2466_v10, %v1064_v31  ;;  %v1376_v31 = vld [vmem:[#allocation2 + $0x8] sm:$0x30] }
 0xaf5   :  { %1157 = vrot.lane.b32.xlu0 %v2956_v32, %s2689_s24 }
 0xb64   :  { %v1082_v33 = vpop.permute.xlu1 %1081 }
 0xb65   :  { %2209 = vmatmul.mubr.msk.f32.vlgmr.msra.gmra.mrb[8].mxu1 %vm101_vm1, %v1082_v33 }
 0xb66   :  { %2358 = vmatpush3.bf16.msra.mxu1 %v2795_v16  ;;  %2230 = vmatprep.mubr.msk.f32.mxu1 %vm2687_vm0, %v2685_v0 }
 0xb67   :  { %v1158_v34 = vpop.permute.xlu0 %1157  ;;  %2359 = vmatprep.subr.bf16.mxu1 %v2686_v1 }
 0xb68   :  { %2220 = vmatmul.mubr.msk.f32.vlgmr.msra.gmra.mrb[12].mxu0 %vm101_vm1, %v1158_v34 }
 0xb69   :  { %2364 = vmatpush3.bf16.msra.mxu0 %v2801_v23  ;;  %2241 = vmatprep.mubr.msk.f32.mxu0 %vm2687_vm0, %v2685_v0 }
 0xb6a   :  { %2361 = vmatpush3.bf16.msra.mxu1 %v2798_v21  ;;  %2365 = vmatprep.subr.bf16.mxu0 %v2686_v1 }
 0xb6b   :  { %2368 = vmatprep.subr.bf16.mxu1 %v2686_v1 }
 0xb6d   :  { %2367 = vmatpush3.bf16.msra.mxu0 %v2809_v27 }
 0xb6e   :  { %2374 = vmatprep.subr.bf16.mxu0 %v2686_v1 }
 0xc38   :  { %v1151_v36 = vpop.f32.mrb[8].mxu1 }
 0xc39   :  { %v1155_v37 = vadd.f32 %v1151_v36, %v1079_v35  ;;  %v2210_v38 = vpop.f32.mrb[9].mxu1 }
 0xc3b   :  { %2471 = vtanh.f32 %v1155_v37  ;;  %v1227_v39 = vpop.f32.mrb[12].mxu0  ;;  %v2018_v48 = vmul.f32 -1.442695, %v1155_v37 }
 0xc3c   :  { %v1232_v40 = vrot.slane %v1227_v39, 2  ;;  %v2221_v41 = vpop.f32.mrb[13].mxu0 }
 0xc3e   :  { %v1234_v44 = vadd.f32 %v1232_v40, %v1156_v42 }
 0xc40   :  { %2473 = vtanh.f32 %v1234_v44  ;;  %v2019_v49 = vmul.f32 -1.442695, %v1234_v44 }
 0xc41   :  { %2475 = vpow2.f32 %v2018_v48 }
 0xc42   :  { %2477 = vpow2.f32 %v2019_v49 }
 0xc45   :  { %v2472_v45 = vpop.eup %2471 }
 0xc46   :  { %1247 = vrot.lane.b32.xlu0 %v2472_v45, %s2688_s4 }
 0xc4a   :  { %v2474_v47 = vpop.eup %2473 }
 0xc4b   :  { %1274 = vrot.lane.b32.xlu1 %v2474_v47, %s2688_s4  ;;  %v2476_v50 = vpop.eup %2475 }
 0xc4c   :  { %v1238_v51 = vadd.f32 1.0, %v2476_v50  ;;  %v2478_v52 = vpop.eup %2477 }
 0xc4d   :  { %v1265_v53 = vadd.f32 1.0, %v2478_v52 }
 0xc4e   :  { %2479 = vrcp.f32 %v1238_v51 }
 0xc4f   :  { %2481 = vrcp.f32 %v1265_v53 }
 0xc58   :  { %v2480_v54 = vpop.eup %2479 }
 0xc59   :  { %v2482_v57 = vpop.eup %2481  ;;  %v1245_v63 = vmul.f32 %v2480_v54, %v1243_v62 }
 0xc5a   :  { %v1272_v5 = vmul.f32 %v2482_v57, %v1270_v4 }
 0xcb8   :  { %v1248_v55 = vpop.permute.xlu0 %1247 }
 0xcb9   :  { %v1250_v56 = vmul.f32 %v2480_v54, %v1248_v55 }
 0xcbb   :  { %1252 = vrot.lane.b32.xlu0 %v1250_v56, %s2689_s24 }
 0xcbd   :  { %v1275_v59 = vpop.permute.xlu1 %1274 }
 0xcbe   :  { %v1277_v60 = vmul.f32 %v2482_v57, %v1275_v59 }
 0xcc0   :  { %1279 = vrot.lane.b32.xlu1 %v1277_v60, %s2689_s24 }
 0xd2d   :  { %v1253_v2 = vpop.permute.xlu0 %1252 }
 0xd2e   :  { %v2979_v3 = vadd.f32 %v1253_v2, %v1245_v63 }
 0xd30   :  { %2483 = vtanh.f32 %v2979_v3  ;;  %v1464_v50 = vrot.slane %v2979_v3, 6 }
 0xd32   :  { %v1280_v6 = vpop.permute.xlu1 %1279 }
 0xd33   :  { %v2983_v7 = vadd.f32 %v1280_v6, %v1272_v5 }
 0xd35   :  { %2485 = vtanh.f32 %v2983_v7 }
 0xd3a   :  { %v2484_v8 = vpop.eup %2483 }
 0xd3b   :  { %1258 = vrot.lane.b32.xlu0 %v2484_v8, %s2688_s4 }
 0xd3f   :  { %v2486_v9 = vpop.eup %2485 }
 0xd40   :  { %1285 = vrot.lane.b32.xlu1 %v2486_v9, %s2688_s4 }
 0xdad   :  { %v1259_v10 = vpop.permute.xlu0 %1258 }
 0xdae   :  { %v1261_v11 = vmul.f32 %v2480_v54, %v1259_v10  ;;  %v1491_v54 = vrot.slane %v2983_v7, 2  ;;  %v1520_v10 = vld [vmem:[#allocation2 + $0x10] sm:$0x30] }
 0xdb0   :  { %1290 = vrot.lane.b32.xlu0 %v1261_v11, %s2689_s24 }
 0xdb2   :  { %v1286_v12 = vpop.permute.xlu1 %1285 }
 0xdb3   :  { %v2989_v13 = vmul.f32 %v2482_v57, %v1286_v12 }
 0xdb5   :  { %v1377_v14 = vrot.slane %v2989_v13, 6 }
 0xdb7   :  { %1378 = vrot.lane.b32.xlu1 %v1377_v14, %s2689_s24 }
 0xe22   :  { %v2993_v17 = vpop.permute.xlu0 %1290 }
 0xe23   :  { %2231 = vmatmul.mubr.msk.f32.vlgmr.msra.gmra.mrb[10].mxu1 %vm101_vm1, %v2993_v17 }
 0xe24   :  { %2370 = vmatpush3.bf16.msra.mxu1 %v2795_v16  ;;  %2252 = vmatprep.mubr.msk.f32.mxu1 %vm2687_vm0, %v2685_v0 }
 0xe25   :  { %2371 = vmatprep.subr.bf16.mxu1 %v2686_v1 }
 0xe28   :  { %2373 = vmatpush3.bf16.msra.mxu1 %v2798_v21 }
 0xe29   :  { %v1379_v18 = vpop.permute.xlu1 %1378  ;;  %2380 = vmatprep.subr.bf16.mxu1 %v2686_v1 }
 0xe2a   :  { %2242 = vmatmul.mubr.msk.f32.vlgmr.msra.gmra.mrb[14].mxu0 %vm101_vm1, %v1379_v18  ;;  %v1600_v18 = vld [vmem:[#allocation2 + $0x8] sm:$0xc] }
 0xe2b   :  { %2376 = vmatpush3.bf16.msra.mxu0 %v2801_v23  ;;  %2263 = vmatprep.mubr.msk.f32.mxu0 %vm2687_vm0, %v2685_v0 }
 0xe2c   :  { %2377 = vmatprep.subr.bf16.mxu0 %v2686_v1 }
 0xe2f   :  { %2379 = vmatpush3.bf16.msra.mxu0 %v2809_v27 }
 0xe30   :  { %2386 = vmatprep.subr.bf16.mxu0 %v2686_v1 }
 0xef6   :  { %v1368_v19 = vpop.f32.mrb[10].mxu1 }
 0xef7   :  { %v1373_v20 = vrot.slane %v1368_v19, 6  ;;  %v2232_v22 = vpop.f32.mrb[11].mxu1 }
 0xef9   :  { %v1375_v25 = vadd.f32 %v1373_v20, %v1299_v24 }
 0xefb   :  { %2487 = vtanh.f32 %v1375_v25  ;;  %v2022_v36 = vmul.f32 -1.442695, %v1375_v25 }
 0xefd   :  { %v1448_v26 = vpop.f32.mrb[14].mxu0 }
 0xefe   :  { %v1453_v28 = vrot.slane %v1448_v26, 4  ;;  %v2243_v30 = vpop.f32.mrb[15].mxu0 }
 0xf00   :  { %v1455_v33 = vadd.f32 %v1453_v28, %v1376_v31 }
 0xf02   :  { %2489 = vtanh.f32 %v1455_v33  ;;  %v2023_v37 = vmul.f32 -1.442695, %v1455_v33 }
 0xf03   :  { %2491 = vpow2.f32 %v2022_v36 }
 0xf04   :  { %2493 = vpow2.f32 %v2023_v37 }
 0xf05   :  { %v2488_v34 = vpop.eup %2487 }
 0xf06   :  { %1468 = vrot.lane.b32.xlu0 %v2488_v34, %s2688_s4 }
 0xf0c   :  { %v2490_v35 = vpop.eup %2489 }
 0xf0d   :  { %1495 = vrot.lane.b32.xlu1 %v2490_v35, %s2688_s4  ;;  %v2492_v38 = vpop.eup %2491 }
 0xf0e   :  { %v1459_v39 = vadd.f32 1.0, %v2492_v38  ;;  %v2494_v40 = vpop.eup %2493 }
 0xf0f   :  { %v1486_v41 = vadd.f32 1.0, %v2494_v40 }
 0xf10   :  { %2495 = vrcp.f32 %v1459_v39 }
 0xf11   :  { %2497 = vrcp.f32 %v1486_v41 }
 0xf1a   :  { %v2496_v42 = vpop.eup %2495 }
 0xf1b   :  { %v2498_v47 = vpop.eup %2497  ;;  %v1466_v51 = vmul.f32 %v2496_v42, %v1464_v50 }
 0xf1c   :  { %v1493_v55 = vmul.f32 %v2498_v47, %v1491_v54 }
 0xf78   :  { %v1469_v44 = vpop.permute.xlu0 %1468 }
 0xf79   :  { %v1471_v45 = vmul.f32 %v2496_v42, %v1469_v44 }
 0xf7b   :  { %1473 = vrot.lane.b32.xlu0 %v1471_v45, %s2689_s24 }
 0xf7f   :  { %v1496_v48 = vpop.permute.xlu1 %1495 }
 0xf80   :  { %v1498_v49 = vmul.f32 %v2498_v47, %v1496_v48 }
 0xf82   :  { %1500 = vrot.lane.b32.xlu1 %v1498_v49, %s2689_s24 }
 0xfed   :  { %v1474_v52 = vpop.permute.xlu0 %1473 }
 0xfee   :  { %v3015_v53 = vadd.f32 %v1474_v52, %v1466_v51 }
 0xff0   :  { %2499 = vtanh.f32 %v3015_v53  ;;  %v1688_v35 = vrot.slane %v3015_v53, 6 }
 0xff4   :  { %v1501_v56 = vpop.permute.xlu1 %1500 }
 0xff5   :  { %v3019_v57 = vadd.f32 %v1501_v56, %v1493_v55 }
 0xff7   :  { %2501 = vtanh.f32 %v3019_v57  ;;  %v1715_v39 = vrot.slane %v3019_v57, 2 }
 0xffa   :  { %v2500_v59 = vpop.eup %2499 }
 0xffb   :  { %1479 = vrot.lane.b32.xlu0 %v2500_v59, %s2688_s4  ;;  %v1744_v59 = vld [vmem:[#allocation2 + $0x10] sm:$0xc0] }
0x1001   :  { %v2502_v60 = vpop.eup %2501 }
0x1002   :  { %1506 = vrot.lane.b32.xlu1 %v2502_v60, %s2688_s4 }
0x106d   :  { %v1480_v62 = vpop.permute.xlu0 %1479 }
0x106e   :  { %v3024_v63 = vmul.f32 %v2496_v42, %v1480_v62  ;;  %v1824_v62 = vld [vmem:[#allocation2 + $0x8] sm:$0x3] }
0x1070   :  { %v1521_v2 = vrot.slane %v3024_v63, 2 }
0x1072   :  { %1522 = vrot.lane.b32.xlu0 %v1521_v2, %s2689_s24 }
0x1074   :  { %v1507_v3 = vpop.permute.xlu1 %1506 }
0x1075   :  { %v3028_v4 = vmul.f32 %v2498_v47, %v1507_v3 }
0x1077   :  { %v1601_v5 = vrot.slane %v3028_v4, 4 }
0x1079   :  { %1602 = vrot.lane.b32.xlu1 %v1601_v5, %s2689_s24 }
0x10e4   :  { %v1523_v6 = vpop.permute.xlu0 %1522 }
0x10e5   :  { %2253 = vmatmul.mubr.msk.f32.vlgmr.msra.gmra.mrb[12].mxu1 %vm101_vm1, %v1523_v6 }
0x10e6   :  { %2382 = vmatpush3.bf16.msra.mxu1 %v2795_v16  ;;  %2274 = vmatprep.mubr.msk.f32.mxu1 %vm2687_vm0, %v2685_v0 }
0x10e7   :  { %2383 = vmatprep.subr.bf16.mxu1 %v2686_v1 }
0x10ea   :  { %2385 = vmatpush3.bf16.msra.mxu1 %v2798_v21 }
0x10eb   :  { %v1603_v7 = vpop.permute.xlu1 %1602 }
0x10ec   :  { %2264 = vmatmul.mubr.msk.f32.vlgmr.msra.gmra.mrb[16].mxu0 %vm101_vm1, %v1603_v7 }
0x10ed   :  { %2388 = vmatpush3.bf16.msra.mxu0 %v2801_v23  ;;  %2285 = vmatprep.mubr.msk.f32.mxu0 %vm2687_vm0, %v2685_v0 }
0x10ee   :  { %2389 = vmatprep.subr.bf16.mxu0 %v2686_v1 }
0x10f1   :  { %2391 = vmatpush3.bf16.msra.mxu0 %v2809_v27 }
0x11b8   :  { %v1592_v16 = vpop.f32.mrb[12].mxu1 }
0x11b9   :  { %v1597_v8 = vrot.slane %v1592_v16, 4  ;;  %v2254_v9 = vpop.f32.mrb[13].mxu1 }
0x11bb   :  { %v1599_v11 = vadd.f32 %v1597_v8, %v1520_v10 }
0x11bd   :  { %2503 = vtanh.f32 %v1599_v11  ;;  %v2026_v1 = vmul.f32 -1.442695, %v1599_v11 }
0x11bf   :  { %v1672_v12 = vpop.f32.mrb[16].mxu0 }
0x11c0   :  { %v1677_v21 = vrot.slane %v1672_v12, 6  ;;  %v2265_v14 = vpop.f32.mrb[17].mxu0 }
0x11c2   :  { %v1679_v19 = vadd.f32 %v1677_v21, %v1600_v18 }
0x11c4   :  { %2505 = vtanh.f32 %v1679_v19  ;;  %v2027_v27 = vmul.f32 -1.442695, %v1679_v19 }
0x11c5   :  { %2507 = vpow2.f32 %v2026_v1 }
0x11c6   :  { %2509 = vpow2.f32 %v2027_v27 }
0x11c7   :  { %v2504_v23 = vpop.eup %2503 }
0x11c8   :  { %1692 = vrot.lane.b32.xlu0 %v2504_v23, %s2688_s4 }
0x11ce   :  { %v2506_v0 = vpop.eup %2505 }
0x11cf   :  { %1719 = vrot.lane.b32.xlu1 %v2506_v0, %s2688_s4  ;;  %v2508_v20 = vpop.eup %2507 }
0x11d0   :  { %v1683_v22 = vadd.f32 1.0, %v2508_v20  ;;  %v2510_v24 = vpop.eup %2509 }
0x11d1   :  { %v1710_v25 = vadd.f32 1.0, %v2510_v24 }
0x11d2   :  { %2511 = vrcp.f32 %v1683_v22 }
0x11d3   :  { %2513 = vrcp.f32 %v1710_v25 }
0x11dc   :  { %v2512_v26 = vpop.eup %2511 }
0x11dd   :  { %v2514_v31 = vpop.eup %2513  ;;  %v1690_v36 = vmul.f32 %v2512_v26, %v1688_v35 }
0x11de   :  { %v1717_v40 = vmul.f32 %v2514_v31, %v1715_v39 }
0x123a   :  { %v1693_v28 = vpop.permute.xlu0 %1692 }
0x123b   :  { %v1695_v30 = vmul.f32 %v2512_v26, %v1693_v28 }
0x123d   :  { %1697 = vrot.lane.b32.xlu0 %v1695_v30, %s2689_s24 }
0x1241   :  { %v1720_v33 = vpop.permute.xlu1 %1719 }
0x1242   :  { %v1722_v34 = vmul.f32 %v2514_v31, %v1720_v33 }
0x1244   :  { %1724 = vrot.lane.b32.xlu1 %v1722_v34, %s2689_s24 }
0x12af   :  { %v1698_v37 = vpop.permute.xlu0 %1697 }
0x12b0   :  { %v1700_v38 = vadd.f32 %v1698_v37, %v1690_v36 }
0x12b2   :  { %2515 = vtanh.f32 %v1700_v38  ;;  %v1909_v1 = vrot.slane %v1700_v38, 6 }
0x12b6   :  { %v1725_v41 = vpop.permute.xlu1 %1724 }
0x12b7   :  { %v1727_v42 = vadd.f32 %v1725_v41, %v1717_v40 }
0x12b9   :  { %2517 = vtanh.f32 %v1727_v42  ;;  %v1936_v24 = vrot.slane %v1727_v42, 2 }
0x12bc   :  { %v2516_v44 = vpop.eup %2515 }
0x12bd   :  { %1703 = vrot.lane.b32.xlu0 %v2516_v44, %s2688_s4 }
0x12c3   :  { %v2518_v45 = vpop.eup %2517 }
0x12c4   :  { %1730 = vrot.lane.b32.xlu1 %v2518_v45, %s2688_s4 }
0x132f   :  { %v1704_v47 = vpop.permute.xlu0 %1703 }
0x1330   :  { %v3052_v48 = vmul.f32 %v2512_v26, %v1704_v47 }
0x1332   :  { %v1745_v49 = vrot.slane %v3052_v48, 4 }
0x1334   :  { %1746 = vrot.lane.b32.xlu0 %v1745_v49, %s2689_s24 }
0x1336   :  { %v1731_v50 = vpop.permute.xlu1 %1730 }
0x1337   :  { %v3056_v51 = vmul.f32 %v2514_v31, %v1731_v50 }
0x1339   :  { %v1825_v52 = vrot.slane %v3056_v51, 2 }
0x133b   :  { %1826 = vrot.lane.b32.xlu1 %v1825_v52, %s2689_s24 }
0x13a6   :  { %v1747_v53 = vpop.permute.xlu0 %1746 }
0x13a7   :  { %2275 = vmatmul.mubr.msk.f32.vlgmr.msra.gmra.mrb[14].mxu1 %vm101_vm1, %v1747_v53 }
0x13ad   :  { %v1827_v54 = vpop.permute.xlu1 %1826 }
0x13ae   :  { %2286 = vmatmul.mubr.msk.f32.vlgmr.msra.gmra.mrb[18].mxu0 %vm101_vm1, %v1827_v54 }
0x147a   :  { %v1816_v55 = vpop.f32.mrb[14].mxu1 }
0x147b   :  { %v1821_v56 = vrot.slane %v1816_v55, 2  ;;  %v2276_v57 = vpop.f32.mrb[15].mxu1 }
0x147d   :  { %v1823_v60 = vadd.f32 %v1821_v56, %v1744_v59 }
0x147f   :  { %2519 = vtanh.f32 %v1823_v60  ;;  %v2030_v16 = vmul.f32 -1.442695, %v1823_v60 }
0x1481   :  { %v1896_v2 = vpop.f32.mrb[18].mxu0 }
0x1482   :  { %v1900_v3 = vadd.f32 %v1896_v2, %v1824_v62  ;;  %v2287_v5 = vpop.f32.mrb[19].mxu0 }
0x1484   :  { %2521 = vtanh.f32 %v1900_v3  ;;  %v2031_v8 = vmul.f32 -1.442695, %v1900_v3 }
0x1485   :  { %2523 = vpow2.f32 %v2030_v16 }
0x1486   :  { %2525 = vpow2.f32 %v2031_v8 }
0x1489   :  { %v2520_v6 = vpop.eup %2519 }
0x148a   :  { %1913 = vrot.lane.b32.xlu0 %v2520_v6, %s2688_s4 }
0x148e   :  { %v2522_v7 = vpop.eup %2521 }
0x148f   :  { %1940 = vrot.lane.b32.xlu1 %v2522_v7, %s2688_s4  ;;  %v2524_v9 = vpop.eup %2523 }
0x1490   :  { %v1904_v10 = vadd.f32 1.0, %v2524_v9  ;;  %v2526_v11 = vpop.eup %2525 }
0x1491   :  { %v1931_v12 = vadd.f32 1.0, %v2526_v11 }
0x1492   :  { %2527 = vrcp.f32 %v1904_v10 }
0x1493   :  { %2529 = vrcp.f32 %v1931_v12 }
0x149c   :  { %v2528_v21 = vpop.eup %2527 }
0x149d   :  { %v2530_v19 = vpop.eup %2529  ;;  %v1911_v27 = vmul.f32 %v2528_v21, %v1909_v1 }
0x149e   :  { %v1938_v25 = vmul.f32 %v2530_v19, %v1936_v24 }
0x14fc   :  { %v1914_v14 = vpop.permute.xlu0 %1913 }
0x14fd   :  { %v1916_v18 = vmul.f32 %v2528_v21, %v1914_v14 }
0x14ff   :  { %1918 = vrot.lane.b32.xlu0 %v1916_v18, %s2689_s24 }
0x1501   :  { %v1941_v23 = vpop.permute.xlu1 %1940 }
0x1502   :  { %v1943_v0 = vmul.f32 %v2530_v19, %v1941_v23 }
0x1504   :  { %1945 = vrot.lane.b32.xlu1 %v1943_v0, %s2689_s24 }
0x1571   :  { %v1919_v20 = vpop.permute.xlu0 %1918 }
0x1572   :  { %v1921_v22 = vadd.f32 %v1919_v20, %v1911_v27 }
0x1574   :  { %2531 = vtanh.f32 %v1921_v22 }
0x1576   :  { %v1946_v26 = vpop.permute.xlu1 %1945 }
0x1577   :  { %v1948_v28 = vadd.f32 %v1946_v26, %v1938_v25 }
0x1579   :  { %2533 = vtanh.f32 %v1948_v28 }
0x157e   :  { %v2532_v30 = vpop.eup %2531 }
0x157f   :  { %1924 = vrot.lane.b32.xlu0 %v2532_v30, %s2688_s4 }
0x1583   :  { %v2534_v31 = vpop.eup %2533  ;;  %402 = vrot.lane.b32.xlu0 %v2847_v15, %s2688_s4 }
0x1584   :  { %1951 = vrot.lane.b32.xlu1 %v2534_v31, %s2688_s4 }
0x1587   :  { %625 = vrot.lane.b32.xlu0 %v2884_v61, %s2688_s4 }
0x1588   :  { %619 = vrot.lane.b32.xlu1 %v2880_v58, %s2689_s24 }
0x158b   :  { %851 = vrot.lane.b32.xlu0 %v2920_v46, %s2688_s4 }
0x158c   :  { %845 = vrot.lane.b32.xlu1 %v2916_v43, %s2689_s24 }
0x158f   :  { %1074 = vrot.lane.b32.xlu0 %v2956_v32, %s2688_s4 }
0x1590   :  { %1068 = vrot.lane.b32.xlu1 %v2952_v29, %s2689_s24 }
0x1593   :  { %1295 = vrot.lane.b32.xlu0 %v2989_v13, %s2688_s4 }
0x1594   :  { %1511 = vrot.lane.b32.xlu1 %v3024_v63, %s2689_s24 }
0x1597   :  { %1516 = vrot.lane.b32.xlu0 %v3028_v4, %s2688_s4 }
0x1598   :  { %1735 = vrot.lane.b32.xlu1 %v3052_v48, %s2689_s24 }
0x159b   :  { %1740 = vrot.lane.b32.xlu0 %v3056_v51, %s2688_s4 }
0x15f1   :  { %v1925_v15 = vpop.permute.xlu0 %1924 }
0x15f2   :  { %v1927_v58 = vmul.f32 %v2528_v21, %v1925_v15 }
0x15f4   :  { %1956 = vrot.lane.b32.xlu1 %v1927_v58, %s2689_s24 }
0x15f5   :  { %v403_v61 = vpop.permute.xlu0 %402 }
0x15f6   :  { %406 = vst.msk [vmem:[#allocation11 + $0x8] sm:$0xc0] %vm405_vm3, %v403_v61  ;;  %v1952_v43 = vpop.permute.xlu1 %1951 }
0x15f7   :  { %v1954_v46 = vmul.f32 %v2530_v19, %v1952_v43 }
0x15f9   :  { %1961 = vrot.lane.b32.xlu1 %v1954_v46, %s2688_s4  ;;  %v626_v29 = vpop.permute.xlu0 %625 }
0x15fa   :  { %629 = vst.msk [vmem:[#allocation11 + $0x8] sm:$0x30] %vm628_vm4, %v626_v29  ;;  %v620_v32 = vpop.permute.xlu1 %619 }
0x15fb   :  { %623 = vst.msk [vmem:[#allocation11] sm:$0xc] %vm622_vm5, %v620_v32 }
0x15fd   :  { %v852_v13 = vpop.permute.xlu0 %851 }
0x15fe   :  { %855 = vst.msk [vmem:[#allocation11 + $0x8] sm:$0xc] %vm854_vm6, %v852_v13  ;;  %v846_v63 = vpop.permute.xlu1 %845 }
0x15ff   :  { %849 = vst.msk [vmem:[#allocation11] sm:$0x30] %vm848_vm7, %v846_v63 }
0x1601   :  { %v1075_v4 = vpop.permute.xlu0 %1074 }
0x1602   :  { %1078 = vst.msk [vmem:[#allocation11 + $0x8] sm:$0x3] %vm1077_vm8, %v1075_v4  ;;  %v1069_v33 = vpop.permute.xlu1 %1068 }
0x1603   :  { %1293 = vst.msk [vmem:[#allocation11 + $0x8] sm:$0x3] %vm399_vm2, %v2993_v17 }
0x1604   :  { %1072 = vst.msk [vmem:[#allocation11] sm:$0xc0] %vm1071_vm9, %v1069_v33 }
0x1605   :  { %v1296_v34 = vpop.permute.xlu0 %1295 }
0x1606   :  { %1298 = vst.msk [vmem:[#allocation11] sm:$0xc0] %vm405_vm3, %v1296_v34  ;;  %v1512_v35 = vpop.permute.xlu1 %1511 }
0x1607   :  { %1514 = vst.msk [vmem:[#allocation11 + $0x8] sm:$0xc] %vm622_vm5, %v1512_v35 }
0x1609   :  { %v1517_v36 = vpop.permute.xlu0 %1516 }
0x160a   :  { %1519 = vst.msk [vmem:[#allocation11] sm:$0x30] %vm628_vm4, %v1517_v36  ;;  %v1736_v37 = vpop.permute.xlu1 %1735 }
0x160b   :  { %1738 = vst.msk [vmem:[#allocation11 + $0x8] sm:$0x30] %vm848_vm7, %v1736_v37 }
0x160d   :  { %v1741_v38 = vpop.permute.xlu0 %1740 }
0x160e   :  { %1743 = vst.msk [vmem:[#allocation11] sm:$0xc] %vm854_vm6, %v1741_v38 }
0x1666   :  { %v1957_v39 = vpop.permute.xlu1 %1956 }
0x1667   :  { %1959 = vst.msk [vmem:[#allocation11 + $0x8] sm:$0xc0] %vm1071_vm9, %v1957_v39  ;;  %1965 = vst.msk [vmem:[#allocation12 - $0x6] sm:$0xc0] %vm1071_vm9, %v1957_v39 }
0x166b   :  { %v1962_v17 = vpop.permute.xlu1 %1961 }
0x166c   :  { %1964 = vst.msk [vmem:[#allocation11] sm:$0x3] %vm1077_vm8, %v1962_v17  ;;  %1966 = vst.msk [vmem:[#allocation12] sm:$0x3] %vm1077_vm8, %v1962_v17 }
0x166d   :  { %2634 = shalt.err (!%p2631_p8)
}
0x166e   :  { %s2635_s8 = scalar_lea.hbm %s3144_s5, 256 }
0x166f   :  { %p2636_p9 = scmp.ne.s32.totalorder %s3144_s5, %s2635_s8  ;;  %p2639_p10 = scmp.lt.u32.totalorder %s2635_s8, %s3144_s5 }
0x1671   :  { %p2641_p11 = pnand %p2639_p10, %p2636_p9 }
0x1673   :  { %2644 = shalt.err (!%p2641_p11)
}
0x1674   :  { %1978 = dma.vmem_to_hbm [thread:$0]  %s1973_s26, 256, %s3144_s5, [#allocation5], %s2681_s1, %s2681_s1, %s2682_s21  }
0x1675   :  { %s2645_s14 = scalar_lea.vmem %s1986_s28, 32  ;;  %p2650_p13 = scmp.lt.s32.totalorder %s1986_s28, %s1986_s28 }
0x1676   :  { %p2646_p12 = scmp.ne.s32.totalorder %s1986_s28, %s2645_s14  ;;  %p2651_p0 = scmp.lt.s32.totalorder %s2645_s14, %s2645_s14 }
0x1678   :  { %p2652_p1 = por %p2651_p0, %p2650_p13 }
0x167a   :  { %p2653_p2 = pnand %p2652_p1, %p2646_p12 }
0x167c   :  { %2656 = shalt.err (!%p2653_p2)
}
0x167d   :  { %s2657_s17 = scalar_lea.hbm %s3145_s6, 32 }
0x167e   :  { %p2658_p3 = scmp.ne.s32.totalorder %s3145_s6, %s2657_s17  ;;  %p2661_p4 = scmp.lt.u32.totalorder %s2657_s17, %s3145_s6 }
0x1680   :  { %p2663_p5 = pnand %p2661_p4, %p2658_p3 }
0x1682   :  { %2666 = shalt.err (!%p2663_p5)
}
0x1683   :  { %1988 = dma.vmem_to_hbm [thread:$0]  %s1986_s28, 32, %s3145_s6, [#allocation13]  }
0x1684   :  { %2673 = dma.done.wait [#allocation5], 256  }
0x1685   :  { %2674 = vsyncadd [#allocation5], 4294967040 }
0x1686   :  { %2675 = dma.done.wait [#allocation13], 32  }
0x1687   :  { %2676 = vsyncadd [#allocation13], 4294967264 }
0x1688   :  { %1995 = vsyncpa [#allocation4], 1 }
0x1689   :  { %1996 = vsyncpa [#allocation7], 1 }
0x168a   :  { %1997 = vsyncpa [#allocation10], 1 }
0x168b   :  { %1998 = vsyncpa [#allocation5], 1 }
0x168c   :  { %1999 = vsyncpa [#allocation13], 1 }

</bundles_post_ra>
